<compile_context>
chip_gen: v7x
topology: tpu7x:2x2x1
jax: 0.10.0
libtpu: 0.0.40
codegen_flags: <defaults>
</compile_context>

<pallas_src>
import math
from functools import partial

import jax
import jax.numpy as jnp
from jax.experimental import pallas as pl
from jax.experimental.pallas import tpu as pltpu


def _layernorm_f32(x, w, b, eps=1e-5):
    """LayerNorm computed in float32 (matches the fp16-safe LayerNorm subclass)."""
    xf = x.astype(jnp.float32)
    mu = jnp.mean(xf, axis=-1, keepdims=True)
    var = jnp.mean((xf - mu) ** 2, axis=-1, keepdims=True)
    xn = (xf - mu) * jax.lax.rsqrt(var + eps)
    return xn * w.astype(jnp.float32) + b.astype(jnp.float32)


def resblock_kernel(x_ref,
                    ln1_w_ref, ln1_b_ref,
                    in_w_ref, in_b_ref,
                    out_w_ref, out_b_ref,
                    ln2_w_ref, ln2_b_ref,
                    fc_w_ref, fc_b_ref,
                    proj_w_ref, proj_b_ref,
                    *rest, n_head, with_features, approx_recip):
    if with_features:
        x_out_ref, pre_ref, attn_ref, mlp_ref, ctx_sc = rest
    else:
        x_out_ref, ctx_sc = rest

    x = x_ref[...]                           # (TB, S, D)
    TB, S, D = x.shape
    hd = D // n_head
    scale = 1.0 / math.sqrt(hd)
    cdt = x.dtype                            # compute dtype (bf16 stays bf16 on the MXU)

    # ---- ln_1 (f32 statistics) ----
    xn = _layernorm_f32(x, ln1_w_ref[...], ln1_b_ref[...]).astype(cdt)
    if with_features:
        pre_ref[...] = xn.astype(pre_ref.dtype)      # layer_{i}_pre_attn (batch-first)

    # ---- QKV projection: (TB*S, D) @ (D, 3D), f32 accumulation ----
    xn2d = xn.reshape(TB * S, D)
    qkv = jnp.dot(xn2d, in_w_ref[...], preferred_element_type=jnp.float32)
    qkv = qkv + in_b_ref[...].astype(jnp.float32)    # (TB*S, 3D) f32
    q = (qkv[:, 0:D] * scale).astype(cdt)
    k = qkv[:, D:2 * D].astype(cdt)
    v = qkv[:, 2 * D:3 * D].astype(cdt)

    # ---- per-head attention (single-batch-dim einsums over TB) ----
    # Softmax stats in f32; normalization folded into ctx (S*hd instead of S*S mults);
    # ctx scratch in compute dtype (halves scratch VMEM + store traffic).
    for h in range(n_head):                  # static loop over heads
        lo = h * hd
        qh = q[:, lo:lo + hd].reshape(TB, S, hd)
        kh = k[:, lo:lo + hd].reshape(TB, S, hd)
        vh = v[:, lo:lo + hd].reshape(TB, S, hd)
        s = jnp.einsum("bqd,bkd->bqk", qh, kh,
                       preferred_element_type=jnp.float32)   # (TB, S, S) f32
        m = jnp.max(s, axis=-1, keepdims=True)
        p = jnp.exp(s - m)                                    # unnormalized probs
        denom = jnp.sum(p, axis=-1, keepdims=True)            # (TB, S, 1) f32
        if approx_recip:
            inv = pl.reciprocal(denom, approx=True)           # EUP slot, VALU-free
        else:
            inv = 1.0 / denom
        ctx_h = jnp.einsum("bqk,bkd->bqd", p.astype(cdt), vh,
                           preferred_element_type=jnp.float32)
        ctx_sc[:, :, lo:lo + hd] = (ctx_h * inv).astype(cdt)

    ctx = ctx_sc[...].reshape(TB * S, D)

    # ---- attention output projection: (TB*S, D) @ (D, D) ----
    attn = jnp.dot(ctx, out_w_ref[...], preferred_element_type=jnp.float32)
    attn = (attn + out_b_ref[...].astype(jnp.float32)).astype(cdt).reshape(TB, S, D)
    if with_features:
        attn_ref[...] = attn.astype(attn_ref.dtype)   # layer_{i}_attn

    x1 = x + attn                            # residual 1

    # ---- ln_2 + MLP (c_fc -> QuickGELU -> c_proj) ----
    xn2 = _layernorm_f32(x1, ln2_w_ref[...], ln2_b_ref[...]).astype(cdt)
    hpre = jnp.dot(xn2.reshape(TB * S, D), fc_w_ref[...],
                   preferred_element_type=jnp.float32)
    hpre = (hpre + fc_b_ref[...].astype(jnp.float32)).astype(cdt)   # (TB*S, 4D), cdt
    g = hpre * jax.nn.sigmoid(1.702 * hpre)                         # QuickGELU in cdt
    mlp = jnp.dot(g, proj_w_ref[...], preferred_element_type=jnp.float32)
    mlp = (mlp + proj_b_ref[...].astype(jnp.float32)).astype(cdt).reshape(TB, S, D)
    if with_features:
        mlp_ref[...] = mlp.astype(mlp_ref.dtype)      # layer_{i}_mlp

    x_out_ref[...] = x1 + mlp                # residual 2


def prepare_layer_params(p):
    """Pre-transpose weights once to contraction-dim-major layout for the kernel."""
    return dict(
        ln1_w=p["ln1_w"], ln1_b=p["ln1_b"],
        in_w=jnp.transpose(p["in_w"]),       # (D, 3D)
        in_b=p["in_b"],
        out_w=jnp.transpose(p["out_w"]),     # (D, D), K-major
        out_b=p["out_b"],
        ln2_w=p["ln2_w"], ln2_b=p["ln2_b"],
        fc_w=jnp.transpose(p["fc_w"]),       # (D, 4D)
        fc_b=p["fc_b"],
        proj_w=jnp.transpose(p["proj_w"]),   # (4D, D)
        proj_b=p["proj_b"],
    )


# --------------------- capability / budget helpers ---------------------
_BUFFERED1_OK = None


def _buffered_one_ok():
    """Probe whether pipeline_mode=pl.Buffered(1) compiles & is correct.

    Weights have constant block indices across the grid, so single-buffering halves
    their VMEM footprint; if the probe fails we fall back to default buffering."""
    global _BUFFERED1_OK
    if _BUFFERED1_OK is None:
        try:
            def _probe(w_ref, o_ref):
                o_ref[...] = w_ref[...] + 1.0

            w = jnp.arange(8 * 128, dtype=jnp.float32).reshape(8, 128)
            out = pl.pallas_call(
                _probe,
                out_shape=jax.ShapeDtypeStruct((16, 128), jnp.float32),
                grid=(2,),
                in_specs=[pl.BlockSpec((8, 128), lambda i: (0, 0),
                                       pipeline_mode=pl.Buffered(1))],
                out_specs=pl.BlockSpec((8, 128), lambda i: (i, 0)),
            )(w)
            out = jax.block_until_ready(out)
            expected = jnp.concatenate([w + 1.0, w + 1.0], axis=0)
            _BUFFERED1_OK = bool(jnp.allclose(out, expected))
        except Exception:
            _BUFFERED1_OK = False
    return _BUFFERED1_OK


def _tpu_vmem_budget():
    """~85% of per-core VMEM (64 MiB v7x, 128 MiB v5e/v6e); conservative fallback."""
    try:
        cap = int(pltpu.get_tpu_info().vmem_capacity_bytes)
    except Exception:
        cap = 64 * 2 ** 20
    return int(0.85 * cap)


def _estimate_vmem_bytes(TB, S, D, H, itemsize, n_out, single_buffered_weights):
    M = TB * S
    wbuf = 1 if single_buffered_weights else 2
    weights = wbuf * (12 * D * D + 16 * D) * itemsize     # all weights + biases
    io = 2 * (1 + n_out) * M * D * itemsize               # double-buffered x + outputs
    qkv = 3 * M * D * 4                                   # f32 qkv
    attn = 3 * TB * S * S * 4                             # per-head scores/probs (f32)
    ctx = M * D * itemsize                                # ctx scratch (compute dtype)
    mlp = M * 4 * D * (4 + itemsize)                      # f32 hpre + cdt gate
    return int(1.25 * (weights + io + qkv + attn + ctx + mlp))


def _pick_batch_tile(B, S, D, H, itemsize, n_out, budget, single_buffered_weights):
    """Largest divisor TB of B whose VMEM estimate fits the budget, with TB*S <= 1024,
    and (when B >= 2) at least two grid steps so both v7x TensorCores get work."""
    best = 1
    for tb in range(1, B + 1):
        if B % tb:
            continue
        if tb * S > 1024:
            continue
        if B >= 2 and B // tb < 2:
            continue
        if _estimate_vmem_bytes(tb, S, D, H, itemsize, n_out,
                                single_buffered_weights) > budget:
            continue
        best = tb
    return best


def residual_attention_block(x_bsd, params, n_head, with_features=True,
                             feature_dtype=None, approx_softmax_recip=True):
    """x_bsd: (B, S, D). params in kernel layout (see prepare_layer_params)."""
    B, S, D = x_bsd.shape
    dt = x_bsd.dtype
    fdt = jnp.dtype(feature_dtype) if feature_dtype is not None else dt
    itemsize = jnp.dtype(dt).itemsize
    n_out = 4 if with_features else 1

    single_buf = _buffered_one_ok()
    budget = _tpu_vmem_budget()
    TB = _pick_batch_tile(B, S, D, n_head, itemsize, n_out, budget, single_buf)
    est = _estimate_vmem_bytes(TB, S, D, n_head, itemsize, n_out, single_buf)
    vmem_limit = min(budget, max(est, 32 * 2 ** 20))

    def wspec(shape):
        # constant block index across the grid -> single-buffer when supported
        if single_buf:
            return pl.BlockSpec(shape, lambda b: (0, 0),
                                pipeline_mode=pl.Buffered(1))
        return pl.BlockSpec(shape, lambda b: (0, 0))

    bsd = pl.BlockSpec((TB, S, D), lambda b: (b, 0, 0))

    in_specs = [
        bsd,
        wspec((1, D)), wspec((1, D)),              # ln_1 w, b
        wspec((D, 3 * D)), wspec((1, 3 * D)),      # in_proj w^T, b
        wspec((D, D)), wspec((1, D)),              # out_proj w^T, b
        wspec((1, D)), wspec((1, D)),              # ln_2 w, b
        wspec((D, 4 * D)), wspec((1, 4 * D)),      # c_fc w^T, b
        wspec((4 * D, D)), wspec((1, D)),          # c_proj w^T, b
    ]
    out_specs = [bsd] * n_out
    out_shape = tuple(
        jax.ShapeDtypeStruct((B, S, D), dt if i == 0 else fdt) for i in range(n_out))

    outs = pl.pallas_call(
        partial(resblock_kernel, n_head=n_head, with_features=with_features,
                approx_recip=approx_softmax_recip),
        out_shape=out_shape,
        grid_spec=pltpu.PrefetchScalarGridSpec(
            num_scalar_prefetch=0,
            grid=(B // TB,),
            in_specs=in_specs,
            out_specs=out_specs,
            scratch_shapes=[pltpu.VMEM((TB, S, D), dt)],   # ctx scratch, compute dtype
        ),
        compiler_params=pltpu.CompilerParams(
            dimension_semantics=("parallel",),
            vmem_limit_bytes=vmem_limit,
        ),
    )(x_bsd,
      params["ln1_w"], params["ln1_b"],
      params["in_w"], params["in_b"],
      params["out_w"], params["out_b"],
      params["ln2_w"], params["ln2_b"],
      params["fc_w"], params["fc_b"],
      params["proj_w"], params["proj_b"])

    if with_features:
        return outs
    return outs[0], None, None, None


def transformer_forward(x_sbd, layer_params, n_head, collect_features=True,
                        feature_dtype=None, approx_softmax_recip=True):
    """x_sbd: (S, B, D) like the PyTorch module. layer_params in kernel layout.

    Returns (x_out (S, B, D), features dict of (B, S, D) arrays)."""
    x = jnp.transpose(x_sbd, (1, 0, 2))      # -> (B, S, D)
    features = {}
    for idx, params in enumerate(layer_params):
        x, pre, attn, mlp = residual_attention_block(
            x, params, n_head, with_features=collect_features,
            feature_dtype=feature_dtype,
            approx_softmax_recip=approx_softmax_recip)
        if collect_features:
            features[f"layer_{idx}_pre_attn"] = pre
            features[f"layer_{idx}_attn"] = attn
            features[f"layer_{idx}_mlp"] = mlp
    return jnp.transpose(x, (1, 0, 2)), features


# ---------------- pure-JAX reference (for correctness check) ----------------
def _ref_block(x, p, n_head):
    # x: (B, S, D); p in original PyTorch layout.
    D = x.shape[-1]
    hd = D // n_head

    def ln(v, w, b):
        mu = jnp.mean(v, -1, keepdims=True)
        var = jnp.mean((v - mu) ** 2, -1, keepdims=True)
        return (v - mu) / jnp.sqrt(var + 1e-5) * w[0] + b[0]

    xn = ln(x, p["ln1_w"], p["ln1_b"])
    qkv = xn @ p["in_w"].T + p["in_b"][0]
    q, k, v = jnp.split(qkv, 3, axis=-1)
    q = q / jnp.sqrt(hd)
    B, S, _ = x.shape
    qh = q.reshape(B, S, n_head, hd).transpose(0, 2, 1, 3)
    kh = k.reshape(B, S, n_head, hd).transpose(0, 2, 1, 3)
    vh = v.reshape(B, S, n_head, hd).transpose(0, 2, 1, 3)
    s = jnp.einsum("bhqd,bhkd->bhqk", qh, kh)
    pr = jax.nn.softmax(s, axis=-1)
    ctx = jnp.einsum("bhqk,bhkd->bhqd", pr, vh).transpose(0, 2, 1, 3).reshape(B, S, D)
    attn = ctx @ p["out_w"].T + p["out_b"][0]
    x1 = x + attn
    xn2 = ln(x1, p["ln2_w"], p["ln2_b"])
    h = xn2 @ p["fc_w"].T + p["fc_b"][0]
    g = h * jax.nn.sigmoid(1.702 * h)
    mlp = g @ p["proj_w"].T + p["proj_b"][0]
    return x1 + mlp


if __name__ == "__main__":
    # Small shapes: seq=8, batch=2, width=32, heads=4, layers=2.
    S, B, D, H, L = 8, 2, 32, 4, 2

    key = jax.random.PRNGKey(0)
    key, kx = jax.random.split(key)
    x = jax.random.normal(kx, (S, B, D), dtype=jnp.float32)  # (seq, batch, width)

    torch_layout_params = []
    for _ in range(L):
        keys = jax.random.split(key, 8)
        key = keys[0]
        p = dict(
            ln1_w=jnp.ones((1, D), jnp.float32),
            ln1_b=jnp.zeros((1, D), jnp.float32),
            in_w=0.02 * jax.random.normal(keys[1], (3 * D, D), jnp.float32),
            in_b=0.01 * jax.random.normal(keys[2], (1, 3 * D), jnp.float32),
            out_w=0.02 * jax.random.normal(keys[3], (D, D), jnp.float32),
            out_b=0.01 * jax.random.normal(keys[4], (1, D), jnp.float32),
            ln2_w=jnp.ones((1, D), jnp.float32),
            ln2_b=jnp.zeros((1, D), jnp.float32),
            fc_w=0.02 * jax.random.normal(keys[5], (4 * D, D), jnp.float32),
            fc_b=0.01 * jax.random.normal(keys[6], (1, 4 * D), jnp.float32),
            proj_w=0.02 * jax.random.normal(keys[7], (D, 4 * D), jnp.float32),
            proj_b=jnp.zeros((1, D), jnp.float32),
        )
        torch_layout_params.append(p)

    # Pre-transpose weights once for the kernel.
    kernel_params = [prepare_layer_params(p) for p in torch_layout_params]

    out, feats = transformer_forward(x, kernel_params, H, collect_features=True)
    out = jax.block_until_ready(out)
    feats = jax.tree_util.tree_map(jax.block_until_ready, feats)

    # Features-off variant (inference fast path) must match the main output.
    out_nf, _ = transformer_forward(x, kernel_params, H, collect_features=False)
    out_nf = jax.block_until_ready(out_nf)

    # sanity check against pure-JAX reference
    xr = jnp.transpose(x, (1, 0, 2))
    for p in torch_layout_params:
        xr = _ref_block(xr, p, H)
    xr = jnp.transpose(xr, (1, 0, 2))
    # tolerance loosened slightly vs exact because softmax uses approx reciprocal (EUP)
    assert jnp.allclose(out, xr, atol=1e-3, rtol=1e-3), "mismatch vs reference"
    assert jnp.allclose(out_nf, out, atol=1e-5, rtol=1e-5), "features-off variant mismatch"
    assert out.shape == (S, B, D)
    assert feats["layer_0_pre_attn"].shape == (B, S, D)
    assert feats["layer_1_attn"].shape == (B, S, D)
    assert feats["layer_1_mlp"].shape == (B, S, D)

    print("KERNEL_OK")
</pallas_src>

<mosaic_0001>
module attributes {stable_mosaic.version = 11 : i64} {
  func.func @_probe(%arg0: i32, %arg1: memref<8x128xf32, #tpu.memory_space<vmem>>, %arg2: memref<8x128xf32, #tpu.memory_space<vmem>>) attributes {dimension_semantics = [#tpu.dimension_semantics<arbitrary>], iteration_bounds = array<i64: 2>, scalar_prefetch = 0 : i64, scratch_operands = 0 : i64, tpu.core_type = #tpu.core_type<tc>, window_params = [{pipeline_mode = #tpu.pipeline_mode<synchronous>, transform_indices = @transform_0, window_bounds = array<i64: 8, 128>}, {transform_indices = @transform_1, window_bounds = array<i64: 8, 128>}]} {
    %c0 = arith.constant 0 : index
    %c0_0 = arith.constant 0 : index
    %0 = vector.load %arg1[%c0, %c0_0] : memref<8x128xf32, #tpu.memory_space<vmem>>, vector<8x128xf32>
    %cst = arith.constant 1.000000e+00 : f32
    %1 = vector.broadcast %cst : f32 to vector<8x128xf32>
    %2 = arith.addf %0, %1 : vector<8x128xf32>
    %c0_1 = arith.constant 0 : index
    %c0_2 = arith.constant 0 : index
    %3 = vector.load %arg2[%c0_1, %c0_2] : memref<8x128xf32, #tpu.memory_space<vmem>>, vector<8x128xf32>
    tpu.vector_store %arg2[%c0_1, %c0_2], %2 {strides = array<i32>} : memref<8x128xf32, #tpu.memory_space<vmem>>, vector<8x128xf32>,
    return
  }
  func.func @transform_0(%arg0: i32) -> (i32, i32) {
    %c0_i32 = arith.constant 0 : i32
    %c0_i32_0 = arith.constant 0 : i32
    %c0_i32_1 = arith.constant 0 : i32
    return %c0_i32, %c0_i32_0 : i32, i32
  }
  func.func @transform_1(%arg0: i32) -> (i32, i32) {
    %c0_i32 = arith.constant 0 : i32
    %c0_i32_0 = arith.constant 0 : i32
    return %arg0, %c0_i32 : i32, i32
  }
}

module attributes {stable_mosaic.version = 11 : i64} {
  func.func @resblock_kernel(%arg0: i32, %arg1: memref<1x8x32xf32, #tpu.memory_space<vmem>>, %arg2: memref<1x32xf32, #tpu.memory_space<vmem>>, %arg3: memref<1x32xf32, #tpu.memory_space<vmem>>, %arg4: memref<32x96xf32, #tpu.memory_space<vmem>>, %arg5: memref<1x96xf32, #tpu.memory_space<vmem>>, %arg6: memref<32x32xf32, #tpu.memory_space<vmem>>, %arg7: memref<1x32xf32, #tpu.memory_space<vmem>>, %arg8: memref<1x32xf32, #tpu.memory_space<vmem>>, %arg9: memref<1x32xf32, #tpu.memory_space<vmem>>, %arg10: memref<32x128xf32, #tpu.memory_space<vmem>>, %arg11: memref<1x128xf32, #tpu.memory_space<vmem>>, %arg12: memref<128x32xf32, #tpu.memory_space<vmem>>, %arg13: memref<1x32xf32, #tpu.memory_space<vmem>>, %arg14: memref<1x8x32xf32, #tpu.memory_space<vmem>>, %arg15: memref<1x8x32xf32, #tpu.memory_space<vmem>>, %arg16: memref<1x8x32xf32, #tpu.memory_space<vmem>>, %arg17: memref<1x8x32xf32, #tpu.memory_space<vmem>>, %arg18: memref<1x8x32xf32, #tpu.memory_space<vmem>>) attributes {dimension_semantics = [#tpu.dimension_semantics<parallel>], iteration_bounds = array<i64: 2>, scalar_prefetch = 0 : i64, scratch_operands = 1 : i64, tpu.core_type = #tpu.core_type<tc>, window_params = [{transform_indices = @transform_0, window_bounds = array<i64: 1, 8, 32>}, {pipeline_mode = #tpu.pipeline_mode<synchronous>, transform_indices = @transform_1, window_bounds = array<i64: 1, 32>}, {pipeline_mode = #tpu.pipeline_mode<synchronous>, transform_indices = @transform_2, window_bounds = array<i64: 1, 32>}, {pipeline_mode = #tpu.pipeline_mode<synchronous>, transform_indices = @transform_3, window_bounds = array<i64: 32, 96>}, {pipeline_mode = #tpu.pipeline_mode<synchronous>, transform_indices = @transform_4, window_bounds = array<i64: 1, 96>}, {pipeline_mode = #tpu.pipeline_mode<synchronous>, transform_indices = @transform_5, window_bounds = array<i64: 32, 32>}, {pipeline_mode = #tpu.pipeline_mode<synchronous>, transform_indices = @transform_6, window_bounds = array<i64: 1, 32>}, {pipeline_mode = #tpu.pipeline_mode<synchronous>, transform_indices = @transform_7, window_bounds = array<i64: 1, 32>}, {pipeline_mode = #tpu.pipeline_mode<synchronous>, transform_indices = @transform_8, window_bounds = array<i64: 1, 32>}, {pipeline_mode = #tpu.pipeline_mode<synchronous>, transform_indices = @transform_9, window_bounds = array<i64: 32, 128>}, {pipeline_mode = #tpu.pipeline_mode<synchronous>, transform_indices = @transform_10, window_bounds = array<i64: 1, 128>}, {pipeline_mode = #tpu.pipeline_mode<synchronous>, transform_indices = @transform_11, window_bounds = array<i64: 128, 32>}, {pipeline_mode = #tpu.pipeline_mode<synchronous>, transform_indices = @transform_12, window_bounds = array<i64: 1, 32>}, {transform_indices = @transform_13, window_bounds = array<i64: 1, 8, 32>}, {transform_indices = @transform_14, window_bounds = array<i64: 1, 8, 32>}, {transform_indices = @transform_15, window_bounds = array<i64: 1, 8, 32>}, {transform_indices = @transform_16, window_bounds = array<i64: 1, 8, 32>}]} {
    %c0 = arith.constant 0 : index
    %c0_0 = arith.constant 0 : index
    %c0_1 = arith.constant 0 : index
    %0 = vector.load %arg1[%c0, %c0_0, %c0_1] : memref<1x8x32xf32, #tpu.memory_space<vmem>>, vector<1x8x32xf32>
    %c0_2 = arith.constant 0 : index
    %c0_3 = arith.constant 0 : index
    %1 = vector.load %arg2[%c0_2, %c0_3] : memref<1x32xf32, #tpu.memory_space<vmem>>, vector<1x32xf32>
    %c0_4 = arith.constant 0 : index
    %c0_5 = arith.constant 0 : index
    %2 = vector.load %arg3[%c0_4, %c0_5] : memref<1x32xf32, #tpu.memory_space<vmem>>, vector<1x32xf32>
    %cst = arith.constant dense<0.000000e+00> : vector<1x8xf32>
    %3 = vector.multi_reduction <add>, %0, %cst [2] : vector<1x8x32xf32> to vector<1x8xf32>
    %4 = vector.shape_cast %3 : vector<1x8xf32> to vector<1x8x1xf32>
    %cst_6 = arith.constant 3.200000e+01 : f32
    %5 = vector.broadcast %cst_6 : f32 to vector<1x8x1xf32>
    %6 = arith.divf %4, %5 : vector<1x8x1xf32>
    %7 = vector.broadcast %6 : vector<1x8x1xf32> to vector<1x8x32xf32>
    %8 = arith.subf %0, %7 : vector<1x8x32xf32>
    %9 = arith.mulf %8, %8 : vector<1x8x32xf32>
    %cst_7 = arith.constant dense<0.000000e+00> : vector<1x8xf32>
    %10 = vector.multi_reduction <add>, %9, %cst_7 [2] : vector<1x8x32xf32> to vector<1x8xf32>
    %11 = vector.shape_cast %10 : vector<1x8xf32> to vector<1x8x1xf32>
    %cst_8 = arith.constant 3.200000e+01 : f32
    %12 = vector.broadcast %cst_8 : f32 to vector<1x8x1xf32>
    %13 = arith.divf %11, %12 : vector<1x8x1xf32>
    %14 = vector.broadcast %6 : vector<1x8x1xf32> to vector<1x8x32xf32>
    %15 = arith.subf %0, %14 : vector<1x8x32xf32>
    %cst_9 = arith.constant 9.99999974E-6 : f32
    %16 = vector.broadcast %cst_9 : f32 to vector<1x8x1xf32>
    %17 = arith.addf %13, %16 : vector<1x8x1xf32>
    %18 = math.rsqrt %17 : vector<1x8x1xf32>
    %19 = vector.broadcast %18 : vector<1x8x1xf32> to vector<1x8x32xf32>
    %20 = arith.mulf %15, %19 : vector<1x8x32xf32>
    %21 = vector.shape_cast %1 : vector<1x32xf32> to vector<1x1x32xf32>
    %22 = vector.broadcast %21 : vector<1x1x32xf32> to vector<1x8x32xf32>
    %23 = arith.mulf %20, %22 : vector<1x8x32xf32>
    %24 = vector.shape_cast %2 : vector<1x32xf32> to vector<1x1x32xf32>
    %25 = vector.broadcast %24 : vector<1x1x32xf32> to vector<1x8x32xf32>
    %26 = arith.addf %23, %25 : vector<1x8x32xf32>
    %c0_10 = arith.constant 0 : index
    %c0_11 = arith.constant 0 : index
    %c0_12 = arith.constant 0 : index
    %27 = vector.load %arg15[%c0_10, %c0_11, %c0_12] : memref<1x8x32xf32, #tpu.memory_space<vmem>>, vector<1x8x32xf32>
    tpu.vector_store %arg15[%c0_10, %c0_11, %c0_12], %26 {strides = array<i32>} : memref<1x8x32xf32, #tpu.memory_space<vmem>>, vector<1x8x32xf32>,
    %28 = vector.shape_cast %26 : vector<1x8x32xf32> to vector<8x32xf32>
    %c0_13 = arith.constant 0 : index
    %c0_14 = arith.constant 0 : index
    %29 = vector.load %arg4[%c0_13, %c0_14] : memref<32x96xf32, #tpu.memory_space<vmem>>, vector<32x96xf32>
    %cst_15 = arith.constant dense<0.000000e+00> : vector<8x96xf32>
    %30 = tpu.matmul %28, %29, %cst_15 {dimension_numbers = #tpu.dot_dimension_numbers<[1], [0], [0], [1], [0, 0, 1, 1], [], []>} : vector<8x32xf32>, vector<32x96xf32>, vector<8x96xf32> -> vector<8x96xf32>
    %c0_16 = arith.constant 0 : index
    %c0_17 = arith.constant 0 : index
    %31 = vector.load %arg5[%c0_16, %c0_17] : memref<1x96xf32, #tpu.memory_space<vmem>>, vector<1x96xf32>
    %32 = vector.broadcast %31 : vector<1x96xf32> to vector<8x96xf32>
    %33 = arith.addf %30, %32 : vector<8x96xf32>
    %34 = vector.extract_strided_slice %33 {offsets = [0, 0], sizes = [8, 32], strides = [1, 1]} : vector<8x96xf32> to vector<8x32xf32>
    %cst_18 = arith.constant 0.353553385 : f32
    %35 = vector.broadcast %cst_18 : f32 to vector<8x32xf32>
    %36 = arith.mulf %34, %35 : vector<8x32xf32>
    %37 = vector.extract_strided_slice %33 {offsets = [0, 32], sizes = [8, 32], strides = [1, 1]} : vector<8x96xf32> to vector<8x32xf32>
    %38 = vector.extract_strided_slice %33 {offsets = [0, 64], sizes = [8, 32], strides = [1, 1]} : vector<8x96xf32> to vector<8x32xf32>
    %39 = vector.extract_strided_slice %36 {offsets = [0, 0], sizes = [8, 8], strides = [1, 1]} : vector<8x32xf32> to vector<8x8xf32>
    %40 = vector.shape_cast %39 : vector<8x8xf32> to vector<1x8x8xf32>
    %41 = vector.extract_strided_slice %37 {offsets = [0, 0], sizes = [8, 8], strides = [1, 1]} : vector<8x32xf32> to vector<8x8xf32>
    %42 = vector.shape_cast %41 : vector<8x8xf32> to vector<1x8x8xf32>
    %43 = vector.extract_strided_slice %38 {offsets = [0, 0], sizes = [8, 8], strides = [1, 1]} : vector<8x32xf32> to vector<8x8xf32>
    %44 = vector.shape_cast %43 : vector<8x8xf32> to vector<1x8x8xf32>
    "tpu.trace_start"() <{level = 10 : i32, message = "bqd,bkd->bqk"}> : () -> ()
    %cst_19 = arith.constant dense<0.000000e+00> : vector<1x8x8xf32>
    %45 = tpu.matmul %40, %42, %cst_19 {dimension_numbers = #tpu.dot_dimension_numbers<[2], [2], [1], [1], [0, 0, 0, 1, 1, 1], [0], [0]>} : vector<1x8x8xf32>, vector<1x8x8xf32>, vector<1x8x8xf32> -> vector<1x8x8xf32>
    "tpu.trace_stop"() : () -> ()
    %cst_20 = arith.constant dense<0xFF800000> : vector<1x8xf32>
    %46 = vector.multi_reduction <maximumf>, %45, %cst_20 [2] : vector<1x8x8xf32> to vector<1x8xf32>
    %47 = vector.shape_cast %46 : vector<1x8xf32> to vector<1x8x1xf32>
    %48 = vector.broadcast %47 : vector<1x8x1xf32> to vector<1x8x8xf32>
    %49 = arith.subf %45, %48 : vector<1x8x8xf32>
    %50 = math.exp %49 : vector<1x8x8xf32>
    %cst_21 = arith.constant dense<0.000000e+00> : vector<1x8xf32>
    %51 = vector.multi_reduction <add>, %50, %cst_21 [2] : vector<1x8x8xf32> to vector<1x8xf32>
    %52 = vector.shape_cast %51 : vector<1x8xf32> to vector<1x8x1xf32>
    %53 = tpu.reciprocal %52 {approx = true} : vector<1x8x1xf32> -> vector<1x8x1xf32>
    "tpu.trace_start"() <{level = 10 : i32, message = "bqk,bkd->bqd"}> : () -> ()
    %cst_22 = arith.constant dense<0.000000e+00> : vector<1x8x8xf32>
    %54 = tpu.matmul %50, %44, %cst_22 {dimension_numbers = #tpu.dot_dimension_numbers<[2], [1], [1], [2], [0, 0, 0, 1, 1, 2], [0], [0]>} : vector<1x8x8xf32>, vector<1x8x8xf32>, vector<1x8x8xf32> -> vector<1x8x8xf32>
    "tpu.trace_stop"() : () -> ()
    %55 = vector.broadcast %53 : vector<1x8x1xf32> to vector<1x8x8xf32>
    %56 = arith.mulf %54, %55 : vector<1x8x8xf32>
    %c0_23 = arith.constant 0 : index
    %c0_24 = arith.constant 0 : index
    %c0_25 = arith.constant 0 : index
    %57 = vector.load %arg18[%c0_23, %c0_24, %c0_25] : memref<1x8x32xf32, #tpu.memory_space<vmem>>, vector<1x8x8xf32>
    tpu.vector_store %arg18[%c0_23, %c0_24, %c0_25], %56 {strides = array<i32>} : memref<1x8x32xf32, #tpu.memory_space<vmem>>, vector<1x8x8xf32>,
    %58 = vector.extract_strided_slice %36 {offsets = [0, 8], sizes = [8, 8], strides = [1, 1]} : vector<8x32xf32> to vector<8x8xf32>
    %59 = vector.shape_cast %58 : vector<8x8xf32> to vector<1x8x8xf32>
    %60 = vector.extract_strided_slice %37 {offsets = [0, 8], sizes = [8, 8], strides = [1, 1]} : vector<8x32xf32> to vector<8x8xf32>
    %61 = vector.shape_cast %60 : vector<8x8xf32> to vector<1x8x8xf32>
    %62 = vector.extract_strided_slice %38 {offsets = [0, 8], sizes = [8, 8], strides = [1, 1]} : vector<8x32xf32> to vector<8x8xf32>
    %63 = vector.shape_cast %62 : vector<8x8xf32> to vector<1x8x8xf32>
    "tpu.trace_start"() <{level = 10 : i32, message = "bqd,bkd->bqk"}> : () -> ()
    %cst_26 = arith.constant dense<0.000000e+00> : vector<1x8x8xf32>
    %64 = tpu.matmul %59, %61, %cst_26 {dimension_numbers = #tpu.dot_dimension_numbers<[2], [2], [1], [1], [0, 0, 0, 1, 1, 1], [0], [0]>} : vector<1x8x8xf32>, vector<1x8x8xf32>, vector<1x8x8xf32> -> vector<1x8x8xf32>
    "tpu.trace_stop"() : () -> ()
    %cst_27 = arith.constant dense<0xFF800000> : vector<1x8xf32>
    %65 = vector.multi_reduction <maximumf>, %64, %cst_27 [2] : vector<1x8x8xf32> to vector<1x8xf32>
    %66 = vector.shape_cast %65 : vector<1x8xf32> to vector<1x8x1xf32>
    %67 = vector.broadcast %66 : vector<1x8x1xf32> to vector<1x8x8xf32>
    %68 = arith.subf %64, %67 : vector<1x8x8xf32>
    %69 = math.exp %68 : vector<1x8x8xf32>
    %cst_28 = arith.constant dense<0.000000e+00> : vector<1x8xf32>
    %70 = vector.multi_reduction <add>, %69, %cst_28 [2] : vector<1x8x8xf32> to vector<1x8xf32>
    %71 = vector.shape_cast %70 : vector<1x8xf32> to vector<1x8x1xf32>
    %72 = tpu.reciprocal %71 {approx = true} : vector<1x8x1xf32> -> vector<1x8x1xf32>
    "tpu.trace_start"() <{level = 10 : i32, message = "bqk,bkd->bqd"}> : () -> ()
    %cst_29 = arith.constant dense<0.000000e+00> : vector<1x8x8xf32>
    %73 = tpu.matmul %69, %63, %cst_29 {dimension_numbers = #tpu.dot_dimension_numbers<[2], [1], [1], [2], [0, 0, 0, 1, 1, 2], [0], [0]>} : vector<1x8x8xf32>, vector<1x8x8xf32>, vector<1x8x8xf32> -> vector<1x8x8xf32>
    "tpu.trace_stop"() : () -> ()
    %74 = vector.broadcast %72 : vector<1x8x1xf32> to vector<1x8x8xf32>
    %75 = arith.mulf %73, %74 : vector<1x8x8xf32>
    %c0_30 = arith.constant 0 : index
    %c0_31 = arith.constant 0 : index
    %c8 = arith.constant 8 : index
    %76 = vector.load %arg18[%c0_30, %c0_31, %c8] : memref<1x8x32xf32, #tpu.memory_space<vmem>>, vector<1x8x8xf32>
    tpu.vector_store %arg18[%c0_30, %c0_31, %c8], %75 {strides = array<i32>} : memref<1x8x32xf32, #tpu.memory_space<vmem>>, vector<1x8x8xf32>,
    %77 = vector.extract_strided_slice %36 {offsets = [0, 16], sizes = [8, 8], strides = [1, 1]} : vector<8x32xf32> to vector<8x8xf32>
    %78 = vector.shape_cast %77 : vector<8x8xf32> to vector<1x8x8xf32>
    %79 = vector.extract_strided_slice %37 {offsets = [0, 16], sizes = [8, 8], strides = [1, 1]} : vector<8x32xf32> to vector<8x8xf32>
    %80 = vector.shape_cast %79 : vector<8x8xf32> to vector<1x8x8xf32>
    %81 = vector.extract_strided_slice %38 {offsets = [0, 16], sizes = [8, 8], strides = [1, 1]} : vector<8x32xf32> to vector<8x8xf32>
    %82 = vector.shape_cast %81 : vector<8x8xf32> to vector<1x8x8xf32>
    "tpu.trace_start"() <{level = 10 : i32, message = "bqd,bkd->bqk"}> : () -> ()
    %cst_32 = arith.constant dense<0.000000e+00> : vector<1x8x8xf32>
    %83 = tpu.matmul %78, %80, %cst_32 {dimension_numbers = #tpu.dot_dimension_numbers<[2], [2], [1], [1], [0, 0, 0, 1, 1, 1], [0], [0]>} : vector<1x8x8xf32>, vector<1x8x8xf32>, vector<1x8x8xf32> -> vector<1x8x8xf32>
    "tpu.trace_stop"() : () -> ()
    %cst_33 = arith.constant dense<0xFF800000> : vector<1x8xf32>
    %84 = vector.multi_reduction <maximumf>, %83, %cst_33 [2] : vector<1x8x8xf32> to vector<1x8xf32>
    %85 = vector.shape_cast %84 : vector<1x8xf32> to vector<1x8x1xf32>
    %86 = vector.broadcast %85 : vector<1x8x1xf32> to vector<1x8x8xf32>
    %87 = arith.subf %83, %86 : vector<1x8x8xf32>
    %88 = math.exp %87 : vector<1x8x8xf32>
    %cst_34 = arith.constant dense<0.000000e+00> : vector<1x8xf32>
    %89 = vector.multi_reduction <add>, %88, %cst_34 [2] : vector<1x8x8xf32> to vector<1x8xf32>
    %90 = vector.shape_cast %89 : vector<1x8xf32> to vector<1x8x1xf32>
    %91 = tpu.reciprocal %90 {approx = true} : vector<1x8x1xf32> -> vector<1x8x1xf32>
    "tpu.trace_start"() <{level = 10 : i32, message = "bqk,bkd->bqd"}> : () -> ()
    %cst_35 = arith.constant dense<0.000000e+00> : vector<1x8x8xf32>
    %92 = tpu.matmul %88, %82, %cst_35 {dimension_numbers = #tpu.dot_dimension_numbers<[2], [1], [1], [2], [0, 0, 0, 1, 1, 2], [0], [0]>} : vector<1x8x8xf32>, vector<1x8x8xf32>, vector<1x8x8xf32> -> vector<1x8x8xf32>
    "tpu.trace_stop"() : () -> ()
    %93 = vector.broadcast %91 : vector<1x8x1xf32> to vector<1x8x8xf32>
    %94 = arith.mulf %92, %93 : vector<1x8x8xf32>
    %c0_36 = arith.constant 0 : index
    %c0_37 = arith.constant 0 : index
    %c16 = arith.constant 16 : index
    %95 = vector.load %arg18[%c0_36, %c0_37, %c16] : memref<1x8x32xf32, #tpu.memory_space<vmem>>, vector<1x8x8xf32>
    tpu.vector_store %arg18[%c0_36, %c0_37, %c16], %94 {strides = array<i32>} : memref<1x8x32xf32, #tpu.memory_space<vmem>>, vector<1x8x8xf32>,
    %96 = vector.extract_strided_slice %36 {offsets = [0, 24], sizes = [8, 8], strides = [1, 1]} : vector<8x32xf32> to vector<8x8xf32>
    %97 = vector.shape_cast %96 : vector<8x8xf32> to vector<1x8x8xf32>
    %98 = vector.extract_strided_slice %37 {offsets = [0, 24], sizes = [8, 8], strides = [1, 1]} : vector<8x32xf32> to vector<8x8xf32>
    %99 = vector.shape_cast %98 : vector<8x8xf32> to vector<1x8x8xf32>
    %100 = vector.extract_strided_slice %38 {offsets = [0, 24], sizes = [8, 8], strides = [1, 1]} : vector<8x32xf32> to vector<8x8xf32>
    %101 = vector.shape_cast %100 : vector<8x8xf32> to vector<1x8x8xf32>
    "tpu.trace_start"() <{level = 10 : i32, message = "bqd,bkd->bqk"}> : () -> ()
    %cst_38 = arith.constant dense<0.000000e+00> : vector<1x8x8xf32>
    %102 = tpu.matmul %97, %99, %cst_38 {dimension_numbers = #tpu.dot_dimension_numbers<[2], [2], [1], [1], [0, 0, 0, 1, 1, 1], [0], [0]>} : vector<1x8x8xf32>, vector<1x8x8xf32>, vector<1x8x8xf32> -> vector<1x8x8xf32>
    "tpu.trace_stop"() : () -> ()
    %cst_39 = arith.constant dense<0xFF800000> : vector<1x8xf32>
    %103 = vector.multi_reduction <maximumf>, %102, %cst_39 [2] : vector<1x8x8xf32> to vector<1x8xf32>
    %104 = vector.shape_cast %103 : vector<1x8xf32> to vector<1x8x1xf32>
    %105 = vector.broadcast %104 : vector<1x8x1xf32> to vector<1x8x8xf32>
    %106 = arith.subf %102, %105 : vector<1x8x8xf32>
    %107 = math.exp %106 : vector<1x8x8xf32>
    %cst_40 = arith.constant dense<0.000000e+00> : vector<1x8xf32>
    %108 = vector.multi_reduction <add>, %107, %cst_40 [2] : vector<1x8x8xf32> to vector<1x8xf32>
    %109 = vector.shape_cast %108 : vector<1x8xf32> to vector<1x8x1xf32>
    %110 = tpu.reciprocal %109 {approx = true} : vector<1x8x1xf32> -> vector<1x8x1xf32>
    "tpu.trace_start"() <{level = 10 : i32, message = "bqk,bkd->bqd"}> : () -> ()
    %cst_41 = arith.constant dense<0.000000e+00> : vector<1x8x8xf32>
    %111 = tpu.matmul %107, %101, %cst_41 {dimension_numbers = #tpu.dot_dimension_numbers<[2], [1], [1], [2], [0, 0, 0, 1, 1, 2], [0], [0]>} : vector<1x8x8xf32>, vector<1x8x8xf32>, vector<1x8x8xf32> -> vector<1x8x8xf32>
    "tpu.trace_stop"() : () -> ()
    %112 = vector.broadcast %110 : vector<1x8x1xf32> to vector<1x8x8xf32>
    %113 = arith.mulf %111, %112 : vector<1x8x8xf32>
    %c0_42 = arith.constant 0 : index
    %c0_43 = arith.constant 0 : index
    %c24 = arith.constant 24 : index
    %114 = vector.load %arg18[%c0_42, %c0_43, %c24] : memref<1x8x32xf32, #tpu.memory_space<vmem>>, vector<1x8x8xf32>
    tpu.vector_store %arg18[%c0_42, %c0_43, %c24], %113 {strides = array<i32>} : memref<1x8x32xf32, #tpu.memory_space<vmem>>, vector<1x8x8xf32>,
    %c0_44 = arith.constant 0 : index
    %c0_45 = arith.constant 0 : index
    %c0_46 = arith.constant 0 : index
    %115 = vector.load %arg18[%c0_44, %c0_45, %c0_46] : memref<1x8x32xf32, #tpu.memory_space<vmem>>, vector<1x8x32xf32>
    %116 = vector.shape_cast %115 : vector<1x8x32xf32> to vector<8x32xf32>
    %c0_47 = arith.constant 0 : index
    %c0_48 = arith.constant 0 : index
    %117 = vector.load %arg6[%c0_47, %c0_48] : memref<32x32xf32, #tpu.memory_space<vmem>>, vector<32x32xf32>
    %cst_49 = arith.constant dense<0.000000e+00> : vector<8x32xf32>
    %118 = tpu.matmul %116, %117, %cst_49 {dimension_numbers = #tpu.dot_dimension_numbers<[1], [0], [0], [1], [0, 0, 1, 1], [], []>} : vector<8x32xf32>, vector<32x32xf32>, vector<8x32xf32> -> vector<8x32xf32>
    %c0_50 = arith.constant 0 : index
    %c0_51 = arith.constant 0 : index
    %119 = vector.load %arg7[%c0_50, %c0_51] : memref<1x32xf32, #tpu.memory_space<vmem>>, vector<1x32xf32>
    %120 = vector.broadcast %119 : vector<1x32xf32> to vector<8x32xf32>
    %121 = arith.addf %118, %120 : vector<8x32xf32>
    %122 = vector.shape_cast %121 : vector<8x32xf32> to vector<1x8x32xf32>
    %c0_52 = arith.constant 0 : index
    %c0_53 = arith.constant 0 : index
    %c0_54 = arith.constant 0 : index
    %123 = vector.load %arg16[%c0_52, %c0_53, %c0_54] : memref<1x8x32xf32, #tpu.memory_space<vmem>>, vector<1x8x32xf32>
    tpu.vector_store %arg16[%c0_52, %c0_53, %c0_54], %122 {strides = array<i32>} : memref<1x8x32xf32, #tpu.memory_space<vmem>>, vector<1x8x32xf32>,
    %124 = arith.addf %0, %122 : vector<1x8x32xf32>
    %c0_55 = arith.constant 0 : index
    %c0_56 = arith.constant 0 : index
    %125 = vector.load %arg8[%c0_55, %c0_56] : memref<1x32xf32, #tpu.memory_space<vmem>>, vector<1x32xf32>
    %c0_57 = arith.constant 0 : index
    %c0_58 = arith.constant 0 : index
    %126 = vector.load %arg9[%c0_57, %c0_58] : memref<1x32xf32, #tpu.memory_space<vmem>>, vector<1x32xf32>
    %cst_59 = arith.constant dense<0.000000e+00> : vector<1x8xf32>
    %127 = vector.multi_reduction <add>, %124, %cst_59 [2] : vector<1x8x32xf32> to vector<1x8xf32>
    %128 = vector.shape_cast %127 : vector<1x8xf32> to vector<1x8x1xf32>
    %cst_60 = arith.constant 3.200000e+01 : f32
    %129 = vector.broadcast %cst_60 : f32 to vector<1x8x1xf32>
    %130 = arith.divf %128, %129 : vector<1x8x1xf32>
    %131 = vector.broadcast %130 : vector<1x8x1xf32> to vector<1x8x32xf32>
    %132 = arith.subf %124, %131 : vector<1x8x32xf32>
    %133 = arith.mulf %132, %132 : vector<1x8x32xf32>
    %cst_61 = arith.constant dense<0.000000e+00> : vector<1x8xf32>
    %134 = vector.multi_reduction <add>, %133, %cst_61 [2] : vector<1x8x32xf32> to vector<1x8xf32>
    %135 = vector.shape_cast %134 : vector<1x8xf32> to vector<1x8x1xf32>
    %cst_62 = arith.constant 3.200000e+01 : f32
    %136 = vector.broadcast %cst_62 : f32 to vector<1x8x1xf32>
    %137 = arith.divf %135, %136 : vector<1x8x1xf32>
    %138 = vector.broadcast %130 : vector<1x8x1xf32> to vector<1x8x32xf32>
    %139 = arith.subf %124, %138 : vector<1x8x32xf32>
    %cst_63 = arith.constant 9.99999974E-6 : f32
    %140 = vector.broadcast %cst_63 : f32 to vector<1x8x1xf32>
    %141 = arith.addf %137, %140 : vector<1x8x1xf32>
    %142 = math.rsqrt %141 : vector<1x8x1xf32>
    %143 = vector.broadcast %142 : vector<1x8x1xf32> to vector<1x8x32xf32>
    %144 = arith.mulf %139, %143 : vector<1x8x32xf32>
    %145 = vector.shape_cast %125 : vector<1x32xf32> to vector<1x1x32xf32>
    %146 = vector.broadcast %145 : vector<1x1x32xf32> to vector<1x8x32xf32>
    %147 = arith.mulf %144, %146 : vector<1x8x32xf32>
    %148 = vector.shape_cast %126 : vector<1x32xf32> to vector<1x1x32xf32>
    %149 = vector.broadcast %148 : vector<1x1x32xf32> to vector<1x8x32xf32>
    %150 = arith.addf %147, %149 : vector<1x8x32xf32>
    %151 = vector.shape_cast %150 : vector<1x8x32xf32> to vector<8x32xf32>
    %c0_64 = arith.constant 0 : index
    %c0_65 = arith.constant 0 : index
    %152 = vector.load %arg10[%c0_64, %c0_65] : memref<32x128xf32, #tpu.memory_space<vmem>>, vector<32x128xf32>
    %cst_66 = arith.constant dense<0.000000e+00> : vector<8x128xf32>
    %153 = tpu.matmul %151, %152, %cst_66 {dimension_numbers = #tpu.dot_dimension_numbers<[1], [0], [0], [1], [0, 0, 1, 1], [], []>} : vector<8x32xf32>, vector<32x128xf32>, vector<8x128xf32> -> vector<8x128xf32>
    %c0_67 = arith.constant 0 : index
    %c0_68 = arith.constant 0 : index
    %154 = vector.load %arg11[%c0_67, %c0_68] : memref<1x128xf32, #tpu.memory_space<vmem>>, vector<1x128xf32>
    %155 = vector.broadcast %154 : vector<1x128xf32> to vector<8x128xf32>
    %156 = arith.addf %153, %155 : vector<8x128xf32>
    %cst_69 = arith.constant 1.702000e+00 : f32
    %157 = vector.broadcast %cst_69 : f32 to vector<8x128xf32>
    %158 = arith.mulf %157, %156 : vector<8x128xf32>
    %159 = arith.negf %158 : vector<8x128xf32>
    %160 = math.exp %159 : vector<8x128xf32>
    %cst_70 = arith.constant 1.000000e+00 : f32
    %161 = vector.broadcast %cst_70 : f32 to vector<8x128xf32>
    %162 = arith.addf %161, %160 : vector<8x128xf32>
    %163 = arith.divf %161, %162 : vector<8x128xf32>
    %164 = arith.mulf %156, %163 : vector<8x128xf32>
    %c0_71 = arith.constant 0 : index
    %c0_72 = arith.constant 0 : index
    %165 = vector.load %arg12[%c0_71, %c0_72] : memref<128x32xf32, #tpu.memory_space<vmem>>, vector<128x32xf32>
    %cst_73 = arith.constant dense<0.000000e+00> : vector<8x32xf32>
    %166 = tpu.matmul %164, %165, %cst_73 {dimension_numbers = #tpu.dot_dimension_numbers<[1], [0], [0], [1], [0, 0, 1, 1], [], []>} : vector<8x128xf32>, vector<128x32xf32>, vector<8x32xf32> -> vector<8x32xf32>
    %c0_74 = arith.constant 0 : index
    %c0_75 = arith.constant 0 : index
    %167 = vector.load %arg13[%c0_74, %c0_75] : memref<1x32xf32, #tpu.memory_space<vmem>>, vector<1x32xf32>
    %168 = vector.broadcast %167 : vector<1x32xf32> to vector<8x32xf32>
    %169 = arith.addf %166, %168 : vector<8x32xf32>
    %170 = vector.shape_cast %169 : vector<8x32xf32> to vector<1x8x32xf32>
    %c0_76 = arith.constant 0 : index
    %c0_77 = arith.constant 0 : index
    %c0_78 = arith.constant 0 : index
    %171 = vector.load %arg17[%c0_76, %c0_77, %c0_78] : memref<1x8x32xf32, #tpu.memory_space<vmem>>, vector<1x8x32xf32>
    tpu.vector_store %arg17[%c0_76, %c0_77, %c0_78], %170 {strides = array<i32>} : memref<1x8x32xf32, #tpu.memory_space<vmem>>, vector<1x8x32xf32>,
    %172 = arith.addf %124, %170 : vector<1x8x32xf32>
    %c0_79 = arith.constant 0 : index
    %c0_80 = arith.constant 0 : index
    %c0_81 = arith.constant 0 : index
    %173 = vector.load %arg14[%c0_79, %c0_80, %c0_81] : memref<1x8x32xf32, #tpu.memory_space<vmem>>, vector<1x8x32xf32>
    tpu.vector_store %arg14[%c0_79, %c0_80, %c0_81], %172 {strides = array<i32>} : memref<1x8x32xf32, #tpu.memory_space<vmem>>, vector<1x8x32xf32>,
    return
  }
  func.func @transform_0(%arg0: i32) -> (i32, i32, i32) {
    %c0_i32 = arith.constant 0 : i32
    %c0_i32_0 = arith.constant 0 : i32
    %c0_i32_1 = arith.constant 0 : i32
    return %arg0, %c0_i32, %c0_i32_0 : i32, i32, i32
  }
  func.func @transform_1(%arg0: i32) -> (i32, i32) {
    %c0_i32 = arith.constant 0 : i32
    %c0_i32_0 = arith.constant 0 : i32
    %c0_i32_1 = arith.constant 0 : i32
    return %c0_i32, %c0_i32_0 : i32, i32
  }
  func.func @transform_2(%arg0: i32) -> (i32, i32) {
    %c0_i32 = arith.constant 0 : i32
    %c0_i32_0 = arith.constant 0 : i32
    %c0_i32_1 = arith.constant 0 : i32
    return %c0_i32, %c0_i32_0 : i32, i32
  }
  func.func @transform_3(%arg0: i32) -> (i32, i32) {
    %c0_i32 = arith.constant 0 : i32
    %c0_i32_0 = arith.constant 0 : i32
    %c0_i32_1 = arith.constant 0 : i32
    return %c0_i32, %c0_i32_0 : i32, i32
  }
  func.func @transform_4(%arg0: i32) -> (i32, i32) {
    %c0_i32 = arith.constant 0 : i32
    %c0_i32_0 = arith.constant 0 : i32
    %c0_i32_1 = arith.constant 0 : i32
    return %c0_i32, %c0_i32_0 : i32, i32
  }
  func.func @transform_5(%arg0: i32) -> (i32, i32) {
    %c0_i32 = arith.constant 0 : i32
    %c0_i32_0 = arith.constant 0 : i32
    %c0_i32_1 = arith.constant 0 : i32
    return %c0_i32, %c0_i32_0 : i32, i32
  }
  func.func @transform_6(%arg0: i32) -> (i32, i32) {
    %c0_i32 = arith.constant 0 : i32
    %c0_i32_0 = arith.constant 0 : i32
    %c0_i32_1 = arith.constant 0 : i32
    return %c0_i32, %c0_i32_0 : i32, i32
  }
  func.func @transform_7(%arg0: i32) -> (i32, i32) {
    %c0_i32 = arith.constant 0 : i32
    %c0_i32_0 = arith.constant 0 : i32
    %c0_i32_1 = arith.constant 0 : i32
    return %c0_i32, %c0_i32_0 : i32, i32
  }
  func.func @transform_8(%arg0: i32) -> (i32, i32) {
    %c0_i32 = arith.constant 0 : i32
    %c0_i32_0 = arith.constant 0 : i32
    %c0_i32_1 = arith.constant 0 : i32
    return %c0_i32, %c0_i32_0 : i32, i32
  }
  func.func @transform_9(%arg0: i32) -> (i32, i32) {
    %c0_i32 = arith.constant 0 : i32
    %c0_i32_0 = arith.constant 0 : i32
    %c0_i32_1 = arith.constant 0 : i32
    return %c0_i32, %c0_i32_0 : i32, i32
  }
  func.func @transform_10(%arg0: i32) -> (i32, i32) {
    %c0_i32 = arith.constant 0 : i32
    %c0_i32_0 = arith.constant 0 : i32
    %c0_i32_1 = arith.constant 0 : i32
    return %c0_i32, %c0_i32_0 : i32, i32
  }
  func.func @transform_11(%arg0: i32) -> (i32, i32) {
    %c0_i32 = arith.constant 0 : i32
    %c0_i32_0 = arith.constant 0 : i32
    %c0_i32_1 = arith.constant 0 : i32
    return %c0_i32, %c0_i32_0 : i32, i32
  }
  func.func @transform_12(%arg0: i32) -> (i32, i32) {
    %c0_i32 = arith.constant 0 : i32
    %c0_i32_0 = arith.constant 0 : i32
    %c0_i32_1 = arith.constant 0 : i32
    return %c0_i32, %c0_i32_0 : i32, i32
  }
  func.func @transform_13(%arg0: i32) -> (i32, i32, i32) {
    %c0_i32 = arith.constant 0 : i32
    %c0_i32_0 = arith.constant 0 : i32
    %c0_i32_1 = arith.constant 0 : i32
    return %arg0, %c0_i32, %c0_i32_0 : i32, i32, i32
  }
  func.func @transform_14(%arg0: i32) -> (i32, i32, i32) {
    %c0_i32 = arith.constant 0 : i32
    %c0_i32_0 = arith.constant 0 : i32
    %c0_i32_1 = arith.constant 0 : i32
    return %arg0, %c0_i32, %c0_i32_0 : i32, i32, i32
  }
  func.func @transform_15(%arg0: i32) -> (i32, i32, i32) {
    %c0_i32 = arith.constant 0 : i32
    %c0_i32_0 = arith.constant 0 : i32
    %c0_i32_1 = arith.constant 0 : i32
    return %arg0, %c0_i32, %c0_i32_0 : i32, i32, i32
  }
  func.func @transform_16(%arg0: i32) -> (i32, i32, i32) {
    %c0_i32 = arith.constant 0 : i32
    %c0_i32_0 = arith.constant 0 : i32
    %c0_i32_1 = arith.constant 0 : i32
    return %arg0, %c0_i32, %c0_i32_0 : i32, i32, i32
  }
}

</mosaic_0001>

<bundles_post_ra>
// kernel: tpu_custom_call.1
= control target key start
LH: loop header
LB: loop body
LE: loop exit
PB: predicated region body
PF: predicated region fallthrough
CT: control target
= control target key end

     0   :  { %6 = vsyncpa [#allocation3], 0  ;;  %s482_s0 = inlined_call_operand.hbm [shape: f32[8,128], index: 0, kind: input, shape index: {}]   ;;  %s483_s1 = inlined_call_operand.hbm [shape: f32[16,128], index: 1, kind: output, shape index: {}]  }
   0x1   :  { %7 = vsyncpa [#allocation4], 0 }
   0x2   :  { %9 = vsyncpa [#allocation4 + $0x1], 0  ;;  %s352_s6 = smov 0   ;;  %s354_s7 = smov 0  }
   0x3   :  { %s356_s8 = smov 0   ;;  %s358_s9 = smov 0  }
   0x4 LB: > { %s373_s10 = sadd.s32 4294967295, %s338_s9   ;;  %s184_s11 = sadd.s32 4294967294, %s338_s9   ;;  %s338_s9 = sphi %s358_s9, %s499_s9   ;;  %s334_s8 = sphi %s356_s8, %s498_s8   ;;  %s330_s7 = sphi %s354_s7, %s497_s7   ;;  %s326_s6 = sphi %s352_s6, %s496_s6  }
   0x5   : > { %s377_s12 = sadd.s32 1, %s338_s9   ;;  %s43_s13 = sadd.s32 1, %s334_s8 }
   0x6   : > { %s40_s14 = ssub.s32 %s338_s9, %s377_s12  ;;  %p53_p0 = scmp.ne.s32.totalorder %s334_s8, %s330_s7 }
   0x7   : > { %p41_p1 = scmp.eq.s32.totalorder %s40_s14, 0  ;;  %p54_p2 = scmp.eq.s32.totalorder %s373_s10, 1 }
   0x8   : > { %p59_p3 = scmp.ne.s32.totalorder %s330_s7, %s326_s6  ;;  %p60_p4 = scmp.eq.s32.totalorder %s184_s11, 1 }
   0x9   : > { %s388_s15 = scalar_select %p41_p1, %s334_s8, %s43_s13  }
   0xa   : > { %p390_p5 = por %p54_p2, %p53_p0  ;;  %p394_p6 = por %p60_p4, %p59_p3 }
   0xb   : > { %p185_p7 = scmp.ge.s32.totalorder %s338_s9, 1  ;;  %p67_p8 = scmp.lt.s32.totalorder %s338_s9, 3 }
   0xc   : > { %s487_s16 = scalar_select %p390_p5, 1, 0 }
   0xd   : > { %s488_s17 = scalar_select %p394_p6, 1, 0 }
   0xe   : > { %p484_p9 = scmp.eq.s32.totalorder %s373_s10, 0  ;;  %p401_p10 = pnand %p185_p7, %p67_p8 }
   0xf   : > { %s340_s19 = smov [#allocation2]   ;;  %s244_s24 = scalar_lea.hbm %s482_s0, 128 }
  0x10   : > { %s489_s18 = scalar_select %p401_p10, 1, 0 }
  0x11   : > { %s80_s20 = sshll.u32 %s340_s19, 4  ;;  %p200_p11 = pneg %p401_p10  ;;  %s81_s20 = int_to_ptr.vmem [resolvable:$true] %s80_s20 }
  0x12   : > { %p245_p13 = scmp.ne.s32.totalorder %s482_s0, %s244_s24  ;;  %p251_p3 = scmp.lt.u32.totalorder %s244_s24, %s482_s0 }
  0x13   : > { %p409_p12 = pnand %p484_p9, %p200_p11 }
  0x15   : > { %p246_p0 = pneg %p409_p12 }
  0x17   : > { %p247_p1 = pnand %p246_p0, %p245_p13 }
  0x19   : > { %p248_p2 = pneg %p247_p1 }
  0x1b   : > { %p253_p4 = pnand %p251_p3, %p248_p2 }
  0x1d   : > { %256 = shalt.err (!%p253_p4)
}
  0x1e   : > { %s257_s29 = scalar_lea.vmem %s81_s20, 128  ;;  %p265_p9 = scmp.lt.s32.totalorder %s81_s20, %s81_s20 }
  0x1f   : > { %p258_p7 = scmp.ne.s32.totalorder %s81_s20, %s257_s29  ;;  %p266_p6 = scmp.lt.s32.totalorder %s257_s29, %s257_s29 }
  0x21   : > { %p260_p8 = pnand %p258_p7, %p246_p0  ;;  %p267_p5 = por %p266_p6, %p265_p9 }
  0x23   : > { %p261_p11 = pneg %p260_p8 }
  0x25   : > { %p268_p10 = pnand %p267_p5, %p261_p11 }
  0x27   : > { %271 = shalt.err (!%p268_p10)
}
  0x28   : > { %203 = dma.hbm_to_vmem [thread:$0]  (!%p409_p12), %s482_s0, 128, %s81_s20, [#allocation3]  }
  0x29   : > { %p491_p13 = scmp.ne.s32.totalorder %s489_s18, 0 }
  0x2a   : > { %p492_p1 = scmp.eq.s32.totalorder (!%p491_p13), %s373_s10, 0 }
  0x2b   : > { %93 = sbr.rel (%p491_p13) target bundleno = 77 (0x4d), region = 24 }
  0x32   : > { %317 = dma.done.wait (%p492_p1), [#allocation3], 128   ;;  %p493_p0 = pmov %p492_p1 }
  0x33   : > { %s105_s3 = sand.u32 1, %s330_s7   ;;  %s191_s13 = sshll.u32 %s373_s10, 7  ;;  %v108_v0 = vld [vmem:[#allocation2] sm:$0xff] }
  0x34   : > { %319 = vsyncadd (%p493_p0), [#allocation3], 4294967168  ;;  %s189_s4 = sshll.u32 %s105_s3, 3  ;;  %v109_v1 = vadd.f32 1.0, %v108_v0  ;;  %s442_s19 = scalar_lea.hbm %s483_s1, %s191_s13 }
  0x35   : > { %s107_s5 = scalar_lea.vmem [#allocation5], %s189_s4  ;;  %s112_s20 = scalar_lea.sflag [#allocation4], %s105_s3 }
  0x36   : > { %s125_s11 = sshll.u32 %s107_s5, 4  ;;  %110 = vst [vmem:[%s107_s5] sm:$0xff] %v109_v1  ;;  %p494_p6 = scmp.ne.s32.totalorder %s487_s16, 0  ;;  %s437_s11 = int_to_ptr.vmem [resolvable:$true] %s125_s11 }
  0x37   : > { %s272_s21 = scalar_lea.vmem %s437_s11, 128  ;;  %s341_s10 = smov [#allocation5]  }
  0x38   : > { %p273_p5 = scmp.ne.s32.totalorder %s437_s11, %s272_s21  ;;  %s276_s22 = sshll.u32 %s341_s10, 4  ;;  %s277_s22 = int_to_ptr.vmem [resolvable:$false] %s276_s22 }
  0x39   : > { %s278_s23 = scalar_lea.vmem %s277_s22, 256  ;;  %p279_p12 = scmp.lt.s32.totalorder %s437_s11, %s277_s22 }
  0x3a   : > { %p274_p9 = pnand %p273_p5, %p494_p6  ;;  %p280_p2 = scmp.lt.s32.totalorder %s278_s23, %s272_s21 }
  0x3c   : > { %p275_p10 = pneg %p274_p9  ;;  %p281_p3 = por %p280_p2, %p279_p12 }
  0x3e   : > { %p282_p4 = pnand %p281_p3, %p275_p10 }
  0x40   : > { %285 = shalt.err (!%p282_p4)
}
  0x41   : > { %s286_s24 = scalar_lea.hbm %s442_s19, 128  ;;  %s290_s27 = scalar_lea.hbm %s483_s1, 256 }
  0x42   : > { %p287_p7 = scmp.ne.s32.totalorder %s442_s19, %s286_s24  ;;  %p291_p13 = scmp.lt.u32.totalorder %s442_s19, %s483_s1 }
  0x43   : > { %p292_p1 = scmp.lt.u32.totalorder %s290_s27, %s286_s24  ;;  %p294_p5 = scmp.lt.u32.totalorder %s286_s24, %s442_s19 }
  0x44   : > { %p288_p8 = pnand %p287_p7, %p494_p6 }
  0x45   : > { %p293_p0 = por %p292_p1, %p291_p13 }
  0x46   : > { %p289_p11 = pneg %p288_p8 }
  0x47   : > { %p295_p9 = por %p294_p5, %p293_p0 }
  0x49   : > { %p296_p10 = pnand %p295_p9, %p289_p11 }
  0x4b   : > { %299 = shalt.err (!%p296_p10)
}
  0x4c   : > { %198 = dma.vmem_to_hbm [thread:$0]  (%p494_p6), %s437_s11, 128, %s442_s19, %s112_s20  }
  0x4d PF: > { %p210_p12 = scmp.ge.s32.totalorder %s338_s9, 2  ;;  %s137_s30 = sand.u32 1, %s326_s6  }
  0x4e   : > { %p495_p2 = scmp.ne.s32.totalorder %s488_s17, 0  ;;  %s138_s2 = scalar_lea.sflag [#allocation4], %s137_s30 }
  0x50   : > { %p205_p3 = pnand %p210_p12, %p495_p2 }
  0x52   : > { %321 = dma.done.wait (!%p205_p3), %s138_s2, 128  }
  0x53   : > { %323 = vsyncadd (!%p205_p3), %s138_s2, 4294967168  ;;  %p12_p4 = scmp.ge.s32.totalorder %s377_s12, 4   ;;  %s496_s6 = smov %s330_s7 }
  0x54   : > { %s497_s7 = smov %s334_s8  ;;  %s498_s8 = smov %s388_s15 }
  0x55   : > { %s499_s9 = smov %s377_s12  ;;  %14 = sbr.rel (!%p12_p4) target bundleno = 4 (0x4), region = 61 }
  0x5c   :  { %143 = vsyncpa [#allocation3], 1 }
  0x5d   :  { %145 = vsyncpa [#allocation3 + $0x1], 1 }
  0x5e   :  { %146 = vsyncpa [#allocation4], 1 }
  0x5f   :  { %148 = vsyncpa [#allocation4 + $0x1], 1 }

// kernel: tpu_custom_call.1
= control target key start
LH: loop header
LB: loop body
LE: loop exit
PB: predicated region body
PF: predicated region fallthrough
CT: control target
= control target key end

     0   :  { %s2882_s0 = inlined_call_operand.vmem [shape: f32[2,8,32], index: 0, kind: input, shape index: {}]   ;;  %s2883_s1 = inlined_call_operand.vmem [shape: f32[1,32], index: 1, kind: input, shape index: {}]   ;;  %s2884_s2 = inlined_call_operand.vmem [shape: f32[1,32], index: 2, kind: input, shape index: {}]   ;;  %s2885_s3 = inlined_call_operand.vmem [shape: f32[32,96], index: 3, kind: input, shape index: {}]   ;;  %s2886_s4 = inlined_call_operand.vmem [shape: f32[1,96], index: 4, kind: input, shape index: {}]   ;;  %s2887_s5 = inlined_call_operand.vmem [shape: f32[32,32], index: 5, kind: input, shape index: {}]   ;;  %s2888_s6 = inlined_call_operand.vmem [shape: f32[1,32], index: 6, kind: input, shape index: {}]   ;;  %s2889_s7 = inlined_call_operand.vmem [shape: f32[1,32], index: 7, kind: input, shape index: {}]   ;;  %s2890_s8 = inlined_call_operand.vmem [shape: f32[1,32], index: 8, kind: input, shape index: {}]   ;;  %s2891_s9 = inlined_call_operand.vmem [shape: f32[32,128], index: 9, kind: input, shape index: {}]   ;;  %s2892_s10 = inlined_call_operand.vmem [shape: f32[1,128], index: 10, kind: input, shape index: {}]   ;;  %s2893_s11 = inlined_call_operand.vmem [shape: f32[128,32], index: 11, kind: input, shape index: {}]   ;;  %s2894_s12 = inlined_call_operand.vmem [shape: f32[1,32], index: 12, kind: input, shape index: {}]   ;;  %s2895_s13 = inlined_call_operand.hbm [shape: f32[2,8,32], index: 13, kind: output, shape index: {0}]   ;;  %s2896_s14 = inlined_call_operand.hbm [shape: f32[2,8,32], index: 14, kind: output, shape index: {1}]   ;;  %s2897_s15 = inlined_call_operand.hbm [shape: f32[2,8,32], index: 15, kind: output, shape index: {2}]   ;;  %s2898_s16 = inlined_call_operand.hbm [shape: f32[2,8,32], index: 16, kind: output, shape index: {3}]  }
   0x1   :  { %2904 = sst [smem:[#allocation15_spill]] %s2882_s0 }
   0x2   :  { %2905 = sst [smem:[#allocation16_spill]] %s2883_s1 }
   0x3   :  { %2906 = sst [smem:[#allocation17_spill]] %s2884_s2 }
   0x4   :  { %2907 = sst [smem:[#allocation18_spill]] %s2885_s3 }
   0x5   :  { %2908 = sst [smem:[#allocation19_spill]] %s2886_s4 }
   0x6   :  { %2909 = sst [smem:[#allocation20_spill]] %s2887_s5 }
   0x7   :  { %2910 = sst [smem:[#allocation21_spill]] %s2888_s6 }
   0x8   :  { %22 = vsyncpa [#allocation4], 0 }
   0x9   :  { %24 = vsyncpa [#allocation4 + $0x1], 0 }
   0xa   :  { %25 = vsyncpa [#allocation6], 0 }
   0xb   :  { %27 = vsyncpa [#allocation6 + $0x1], 0 }
   0xc   :  { %28 = vsyncpa [#allocation9], 0 }
   0xd   :  { %30 = vsyncpa [#allocation9 + $0x1], 0  ;;  %s2465_s21 = smov 0   ;;  %s2467_s22 = smov 0  }
   0xe   :  { %s2469_s23 = smov 0   ;;  %s2471_s24 = smov 0  }
   0xf LB: > { %2911 = sst [smem:[#allocation13_spill]] %s2353_s23  ;;  %s2486_s25 = sadd.s32 4294967295, %s2357_s24   ;;  %s2357_s24 = sphi %s2471_s24, %s2930_s24   ;;  %s2353_s23 = sphi %s2469_s23, %s2927_s23   ;;  %s2349_s22 = sphi %s2467_s22, %s2929_s22   ;;  %s2345_s21 = sphi %s2465_s21, %s2928_s21  }
  0x10   : > { %s2899_s26 = sadd.s32 4294967294, %s2357_s24   ;;  %s2490_s27 = sadd.s32 1, %s2357_s24  }
  0x11   : > { %s321_s28 = sadd.s32 1, %s2353_s23  ;;  %s318_s29 = ssub.s32 %s2357_s24, %s2490_s27 }
  0x12   : > { %p331_p0 = scmp.ne.s32.totalorder %s2353_s23, %s2349_s22  ;;  %p319_p1 = scmp.eq.s32.totalorder %s318_s29, 0 }
  0x13   : > { %p332_p2 = scmp.eq.s32.totalorder %s2486_s25, 1  ;;  %p337_p3 = scmp.ne.s32.totalorder %s2349_s22, %s2345_s21 }
  0x14   : > { %p338_p4 = scmp.eq.s32.totalorder %s2899_s26, 1  ;;  %p1870_p7 = scmp.ge.s32.totalorder %s2357_s24, 1 }
  0x15   : > { %s2503_s30 = scalar_select %p319_p1, %s2353_s23, %s321_s28  }
  0x16   : > { %p2505_p5 = por %p332_p2, %p331_p0  ;;  %p2509_p6 = por %p338_p4, %p337_p3 }
  0x17   : > { %2912 = sst [smem:[#allocation14_spill]] %s2503_s30  ;;  %p477_p8 = scmp.lt.s32.totalorder %s2357_s24, 3 }
  0x19   : > { %p478_p9 = pnand %p1870_p7, %p477_p8 }
  0x1a   : > { %p541_p10 = scmp.lt.s32.totalorder (!%p478_p9), %s2486_s25, 1  ;;  %vm548_vm0 = vcmask (!%p478_p9), 261120   ;;  %s2915_s29 = sld [smem:[#allocation15_spill]] (!%p478_p9)  ;;  %v2359_v10 = vmov (!%p478_p9), 0.0|0.0   ;;  %vm2360_vm1 = vmmov (!%p478_p9), 0   ;;  %v2361_v13 = vmov (!%p478_p9), 0.0  }
  0x1b   : > { %481 = sbr.rel (%p478_p9) target bundleno = 2432 (0x980), region = 72  ;;  %s2916_s3 = sld [smem:[#allocation18_spill]] (!%p478_p9)  ;;  %2066 = vmatprep.subr.bf16.mxu1 (!%p478_p9), %v2359_v10  ;;  %1966 = vmatprep.mubr.msk.f32.mxu1 (!%p478_p9), %vm2360_vm1, %v2361_v13  ;;  %vm666_vm2 = vcmask (!%p478_p9), 64512   ;;  %vm999_vm3 = vcmask (!%p478_p9), 130112   ;;  %vm1170_vm4 = vcmask (!%p478_p9), 195712   ;;  %vm1341_vm5 = vcmask (!%p478_p9), 261312  }
  0x1c   : > { %1979 = vmatprep.subr.mxu0 (!%p478_p9), %v2361_v13  ;;  %1981 = vmatprep.mubr.msk.f32.mxu0 (!%p478_p9), %vm2360_vm1, %v2361_v13  ;;  %s2547_s23 = sand.u32 (!%p478_p9), 1, %s2349_s22   ;;  %s2917_s1 = sld [smem:[#allocation16_spill]] (!%p478_p9) }
  0x1d   : > { %s2553_s20 = sshll.u32 (!%p478_p9), %s2547_s23, 3  ;;  %s2918_s2 = sld [smem:[#allocation17_spill]] (!%p478_p9) }
  0x1e   : > { %s2901_s28 = scalar_lea.vmem (!%p478_p9), [#allocation5], %s2553_s20  ;;  %s2919_s4 = sld [smem:[#allocation19_spill]] (!%p478_p9) }
  0x1f   : > { %s2368_s30 = smov (!%p478_p9), 104   ;;  %s2920_s5 = sld [smem:[#allocation20_spill]] (!%p478_p9) }
  0x20   : > { %s2921_s6 = sld [smem:[#allocation21_spill]] (!%p478_p9) }
  0x21   : > { %v578_v7 = vld [vmem:[%s2916_s3] sm:$0xff] (!%p478_p9)  ;;  %v579_v8 = vld [vmem:[%s2916_s3 + $0x8] sm:$0xff] (!%p478_p9)  ;;  %v580_v9 = vld [vmem:[%s2916_s3 + $0x10] sm:$0xff] (!%p478_p9) }
  0x22   : > { %s542_s18 = scalar_select %p541_p10, %s2486_s25, 1  ;;  %v2067_v11 = vpack.c.bf16 %v579_v8, %v578_v7  ;;  %v581_v12 = vld [vmem:[%s2916_s3 + $0x18] sm:$0xff]  ;;  %v1876_v19 = vld [vmem:[%s2917_s1] ss:$0 sm:$0xff] }
  0x23   : > { %v2070_v14 = vpack.c.bf16 %v581_v12, %v580_v9  ;;  %v1877_v21 = vld [vmem:[%s2918_s2] ss:$0 sm:$0xff]  ;;  %s2366_s1 = smov 72   ;;  %s2369_s2 = smov 64  }
  0x24   : > { %s1875_s19 = sshll.u32 %s542_s18, 3  ;;  %2068 = vmatpush3.bf16.msra.mxu1 %v2067_v11  ;;  %v1878_v24 = vld [vmem:[%s2919_s4] ss:$0 sm:$0xff]  ;;  %s2362_s18 = smov 96  }
  0x25   : > { %s544_s26 = scalar_lea.vmem %s2915_s29, %s1875_s19  ;;  %2069 = vmatprep.subr.bf16.mxu1 %v2359_v10  ;;  %s2363_s19 = smov 120  }
  0x26   : > { %v2520_v0 = vld [vmem:[%s544_s26] sm:$0xff]  ;;  %s2364_s26 = smov 88   ;;  %s2367_s29 = smov 112  }
  0x27   : > { %v549_v1 = vsel %vm548_vm0, %v2520_v0, 0.0  ;;  %s2376_s4 = smov [#allocation5]  }
  0x28   : > { %550 = vadd.xlane.f32.xlu0 %v549_v1  ;;  %2071 = vmatpush3.bf16.msra.mxu1 %v2070_v14 }
  0x29   : > { %1969 = vmatprep.subr.mxu1 %v2361_v13 }
  0xb5   : > { %v551_v2 = vpop.xlane.xlu0 %550 }
  0xb6   : > { %v553_v3 = vmul.f32 0.03125, %v551_v2 }
  0xb8   : > { %v554_v4 = vsub.f32 %v2520_v0, %v553_v3 }
  0xba   : > { %v555_v5 = vmul.f32 %v554_v4, %v554_v4 }
  0xbc   : > { %v556_v6 = vsel %vm548_vm0, %v555_v5, 0.0 }
  0xbd   : > { %557 = vadd.xlane.f32.xlu0 %v556_v6 }
 0x14a   : > { %v558_v15 = vpop.xlane.xlu0 %557 }
 0x14b   : > { %v559_v16 = vmul.f32 0.03125, %v558_v15 }
 0x14d   : > { %v560_v17 = vadd.f32 1e-05, %v559_v16 }
 0x14f   : > { %2179 = vrsqrt.f32 %v560_v17 }
 0x159   : > { %v2180_v18 = vpop.eup %2179 }
 0x15a   : > { %v562_v20 = vmul.f32 %v2180_v18, %v554_v4 }
 0x15c   : > { %v569_v22 = vmul.f32 %v1876_v19, %v562_v20  ;;  %v1344_v19 = vld [vmem:[%s2920_s5] sm:$0xff]  ;;  %v1345_v20 = vld [vmem:[%s2920_s5 + $0x8] sm:$0xff] }
 0x15e   : > { %v576_v23 = vadd.f32 %v1877_v21, %v569_v22 }
 0x160   : > { %1967 = vmatmul.mubr.msk.f32.vlgmr.msra.gmra.mrb[0].mxu1 %vm548_vm0, %v576_v23  ;;  %577 = vst.msk [vmem:[%s2901_s28] sm:$0xff] %vm548_vm0, %v576_v23  ;;  %s2365_s28 = smov 80   ;;  %v2073_v23 = vpack.c.bf16 %v1345_v20, %v1344_v19  ;;  %v1561_v19 = vld [vmem:[%s2893_s11 + $0x50] sm:$0xff]  ;;  %v1562_v20 = vld [vmem:[%s2893_s11 + $0x58] sm:$0xff] }
 0x161   : > { %1971 = vmatprep.mubr.msk.f32.mxu1 %vm2360_vm1, %v2361_v13 }
 0x233   : > { %v658_v25 = vpop.f32.mrb[0].mxu1 }
 0x234   : > { %v2568_v26 = vadd.f32 %v1878_v24, %v658_v25  ;;  %v1968_v27 = vpop.f32.mrb[1].mxu1  ;;  %v1346_v24 = vld [vmem:[%s2920_s5 + $0x10] sm:$0xff]  ;;  %v1347_v25 = vld [vmem:[%s2920_s5 + $0x18] sm:$0xff]  ;;  %s2207_s5 = sshll.u32 %s2376_s4, 4  ;;  %s2208_s5 = int_to_ptr.vmem [resolvable:$false] %s2207_s5 }
 0x236   : > { %664 = vrot.lane.b32.xlu1 %v2568_v26, %s2362_s18  ;;  %v662_v28 = vmul.f32 0.35355338, %v2568_v26  ;;  %s2373_s18 = smov 8  }
 0x238   : > { %830 = vrot.lane.b32.xlu0 %v662_v28, %s2363_s19  ;;  %s2374_s19 = smov 16  }
 0x23a   : > { %832 = vrot.lane.b32.xlu1 %v2568_v26, %s2364_s26  ;;  %s2375_s26 = smov 24  }
 0x23e   : > { %1003 = vrot.lane.b32.xlu1 %v2568_v26, %s2365_s28  ;;  %s2372_s28 = smov 56  }
 0x242   : > { %1174 = vrot.lane.b32.xlu1 %v2568_v26, %s2366_s1  ;;  %s2370_s1 = smov 48  }
 0x246   : > { %1001 = vrot.lane.b32.xlu1 %v662_v28, %s2367_s29  ;;  %s1652_s29 = sand.u32 1, %s2486_s25  }
 0x24a   : > { %1172 = vrot.lane.b32.xlu1 %v662_v28, %s2368_s30  ;;  %s2735_s30 = sshll.u32 %s2486_s25, 7  ;;  %s2209_s25 = scalar_lea.vmem %s2208_s5, 256 }
 0x24e   : > { %752 = vrot.lane.b32.xlu1 %v2568_v26, %s2369_s2  ;;  %s2371_s2 = smov 40  }
 0x2a8   : > { %v665_v29 = vpop.permute.xlu1 %664 }
 0x2a9   : > { %1970 = vmatpush3.xpose.msk.msra.mxu1 %vm666_vm2, %v665_v29 }
 0x2aa   : > { %1974 = vmatprep.subr.mxu1 %v2361_v13  ;;  %v831_v31 = vpop.permute.xlu0 %830 }
 0x2ac   : > { %v833_v30 = vpop.permute.xlu1 %832  ;;  %1972 = vmatmul.mubr.msk.f32.vlgmr.msra.gmra.mrb[2].mxu1 %vm666_vm2, %v662_v28  ;;  %v2076_v28 = vpack.c.bf16 %v1347_v25, %v1346_v24  ;;  %v1565_v25 = vld [vmem:[%s2893_s11 + $0x70] sm:$0xff] }
 0x2ad   : > { %1980 = vmatpush3.xpose.msk.msra.mxu0 %vm666_vm2, %v833_v30  ;;  %1976 = vmatprep.mubr.msk.f32.mxu1 %vm2360_vm1, %v2361_v13 }
 0x2ae   : > { %1989 = vmatprep.subr.mxu0 %v2361_v13 }
 0x2b0   : > { %v1004_v32 = vpop.permute.xlu1 %1003  ;;  %1982 = vmatmul.mubr.msk.f32.vlgmr.msra.gmra.mrb[0].mxu0 %vm666_vm2, %v831_v31 }
 0x2b1   : > { %1990 = vmatpush3.xpose.msk.msra.mxu0 %vm666_vm2, %v1004_v32  ;;  %1991 = vmatprep.mubr.msk.f32.mxu0 %vm2360_vm1, %v2361_v13 }
 0x2b2   : > { %1999 = vmatprep.subr.mxu0 %v2361_v13 }
 0x2b4   : > { %v1175_v33 = vpop.permute.xlu1 %1174 }
 0x2b8   : > { %v1002_v34 = vpop.permute.xlu1 %1001 }
 0x2b9   : > { %1992 = vmatmul.mubr.msk.f32.vlgmr.msra.gmra.mrb[2].mxu0 %vm666_vm2, %v1002_v34 }
 0x2ba   : > { %2000 = vmatpush3.xpose.msk.msra.mxu0 %vm666_vm2, %v1175_v33  ;;  %2001 = vmatprep.mubr.msk.f32.mxu0 %vm2360_vm1, %v2361_v13 }
 0x2bb   : > { %2084 = vmatprep.subr.bf16.mxu0 %v2359_v10 }
 0x2bc   : > { %v1173_v35 = vpop.permute.xlu1 %1172 }
 0x2bd   : > { %2002 = vmatmul.mubr.msk.f32.vlgmr.msra.gmra.mrb[4].mxu0 %vm666_vm2, %v1173_v35 }
 0x2be   : > { %2063 = vmatprep.mubr.msk.f32.mxu0 %vm2360_vm1, %v2361_v13 }
 0x2c0   : > { %v753_v36 = vpop.permute.xlu1 %752 }
 0x2c1   : > { %1975 = vmatpush3.msra.mxu1 %v753_v36 }
 0x2c2   : > { %1984 = vmatprep.subr.mxu1 %v2361_v13 }
 0x37f   : > { %v738_v37 = vpop.f32.mrb[2].mxu1 }
 0x380   : > { %v1973_v38 = vpop.f32.mrb[3].mxu1  ;;  %v742_v39 = vsel %vm666_vm2, %v738_v37, -inf }
 0x381   : > { %743 = vmax.xlane.f32.xlu1 %v742_v39 }
 0x383   : > { %v904_v40 = vpop.f32.mrb[0].mxu0 }
 0x384   : > { %v1983_v41 = vpop.f32.mrb[1].mxu0  ;;  %v908_v42 = vsel %vm666_vm2, %v904_v40, -inf }
 0x385   : > { %909 = vmax.xlane.f32.xlu0 %v908_v42  ;;  %v1892_v41 = vld [vmem:[%s2921_s6] ss:$0 sm:$0xff] }
 0x38c   : > { %v1075_v43 = vpop.f32.mrb[2].mxu0 }
 0x38d   : > { %v1993_v44 = vpop.f32.mrb[3].mxu0  ;;  %v1079_v45 = vsel %vm666_vm2, %v1075_v43, -inf }
 0x38e   : > { %1080 = vmax.xlane.f32.xlu1 %v1079_v45 }
 0x390   : > { %v1246_v46 = vpop.f32.mrb[4].mxu0 }
 0x391   : > { %v2003_v47 = vpop.f32.mrb[5].mxu0  ;;  %v1250_v48 = vsel %vm666_vm2, %v1246_v46, -inf }
 0x392   : > { %1251 = vmax.xlane.f32.xlu0 %v1250_v48 }
 0x39f   : > { %1089 = vrot.lane.b32.xlu1 %v2568_v26, %s2370_s1  ;;  %s2902_s1 = scalar_lea.vmem [#allocation7], %s2553_s20 }
 0x3a3   : > { %1260 = vrot.lane.b32.xlu1 %v2568_v26, %s2371_s2 }
 0x3a8   : > { %918 = vrot.lane.b32.xlu0 %v2568_v26, %s2372_s28 }
 0x40e   : > { %v744_v49 = vpop.xlane.xlu1 %743 }
 0x40f   : > { %v745_v50 = vsub.f32 %v738_v37, %v744_v49 }
 0x411   : > { %v746_v51 = vmul.f32 1.442695, %v745_v50 }
 0x412   : > { %v910_v52 = vpop.xlane.xlu0 %909 }
 0x413   : > { %2181 = vpow2.f32 %v746_v51  ;;  %v911_v53 = vsub.f32 %v904_v40, %v910_v52  ;;  %v1459_v51 = vld [vmem:[%s2891_s9] sm:$0xff] }
 0x415   : > { %v912_v54 = vmul.f32 1.442695, %v911_v53  ;;  %v1461_v53 = vld [vmem:[%s2891_s9 + $0x10] sm:$0xff] }
 0x417   : > { %2183 = vpow2.f32 %v912_v54  ;;  %v1462_v54 = vld [vmem:[%s2891_s9 + $0x18] sm:$0xff] }
 0x41b   : > { %v1081_v55 = vpop.xlane.xlu1 %1080 }
 0x41c   : > { %v1082_v56 = vsub.f32 %v1075_v43, %v1081_v55  ;;  %v2082_v55 = vpack.c.bf16 %v1462_v54, %v1461_v53 }
 0x41d   : > { %v2182_v57 = vpop.eup %2181 }
 0x41e   : > { %v1083_v58 = vmul.f32 1.442695, %v1082_v56  ;;  %1977 = vmatmul.mubr.msk.f32.vlgmr.msra.gmra.mrb[4].mxu1 %vm666_vm2, %v2182_v57  ;;  %v748_v8 = vsel %vm666_vm2, %v2182_v57, 0.0 }
 0x41f   : > { %v1252_v59 = vpop.xlane.xlu0 %1251  ;;  %1986 = vmatprep.mubr.msk.f32.mxu1 %vm2360_vm1, %v2361_v13  ;;  %v1090_v2 = vpop.permute.xlu1 %1089 }
 0x420   : > { %2185 = vpow2.f32 %v1083_v58  ;;  %v1253_v60 = vsub.f32 %v1246_v46, %v1252_v59 }
 0x421   : > { %v2184_v61 = vpop.eup %2183 }
 0x422   : > { %v1254_v62 = vmul.f32 1.442695, %v1253_v60  ;;  %v914_v63 = vsel %vm666_vm2, %v2184_v61, 0.0  ;;  %v1894_v60 = vld [vmem:[%s2889_s7] ss:$0 sm:$0xff] }
 0x423   : > { %915 = vadd.xlane.f32.xlu0 %v914_v63  ;;  %v919_v1 = vpop.permute.xlu0 %918  ;;  %v1261_v4 = vpop.permute.xlu1 %1260 }
 0x424   : > { %2187 = vpow2.f32 %v1254_v62  ;;  %1985 = vmatpush3.msra.mxu1 %v919_v1  ;;  %v1895_v62 = vld [vmem:[%s2890_s8] ss:$0 sm:$0xff] }
 0x425   : > { %1987 = vmatmul.mubr.msk.f32.vlgmr.msra.gmra.mrb[6].mxu1 %vm666_vm2, %v2184_v61  ;;  %1994 = vmatprep.subr.mxu1 %v2361_v13 }
 0x426   : > { %1995 = vmatpush3.msra.mxu1 %v1090_v2  ;;  %1996 = vmatprep.mubr.msk.f32.mxu1 %vm2360_vm1, %v2361_v13  ;;  %v1551_v2 = vld [vmem:[%s2893_s11] sm:$0xff] }
 0x427   : > { %2004 = vmatprep.subr.mxu1 %v2361_v13 }
 0x42a   : > { %v2186_v3 = vpop.eup %2185 }
 0x42b   : > { %1997 = vmatmul.mubr.msk.f32.vlgmr.msra.gmra.mrb[8].mxu1 %vm666_vm2, %v2186_v3  ;;  %v1085_v5 = vsel %vm666_vm2, %v2186_v3, 0.0  ;;  %v1552_v3 = vld [vmem:[%s2893_s11 + $0x8] sm:$0xff] }
 0x42c   : > { %2005 = vmatpush3.msra.mxu1 %v1261_v4  ;;  %1086 = vadd.xlane.f32.xlu1 %v1085_v5  ;;  %v2085_v4 = vpack.c.bf16 %v1552_v3, %v1551_v2  ;;  %v1553_v5 = vld [vmem:[%s2893_s11 + $0x10] sm:$0xff] }
 0x42d   : > { %2006 = vmatprep.mubr.msk.f32.mxu1 %vm2360_vm1, %v2361_v13  ;;  %2072 = vmatprep.subr.bf16.mxu1 %v2359_v10 }
 0x42e   : > { %v2188_v6 = vpop.eup %2187  ;;  %2086 = vmatpush3.bf16.msra.mxu0 %v2085_v4 }
 0x42f   : > { %2007 = vmatmul.mubr.msk.f32.vlgmr.msra.gmra.mrb[10].mxu1 %vm666_vm2, %v2188_v6  ;;  %v1256_v7 = vsel %vm666_vm2, %v2188_v6, 0.0  ;;  %2087 = vmatprep.subr.bf16.mxu0 %v2359_v10  ;;  %v1554_v6 = vld [vmem:[%s2893_s11 + $0x18] sm:$0xff] }
 0x430   : > { %1257 = vadd.xlane.f32.xlu0 %v1256_v7  ;;  %2017 = vmatprep.mubr.msk.f32.mxu1 %vm2360_vm1, %v2361_v13  ;;  %v2088_v7 = vpack.c.bf16 %v1554_v6, %v1553_v5 }
 0x431   : > { %2074 = vmatpush3.bf16.msra.mxu1 %v2073_v23  ;;  %v1564_v23 = vld [vmem:[%s2893_s11 + $0x68] sm:$0xff] }
 0x432   : > { %2075 = vmatprep.subr.bf16.mxu1 %v2359_v10  ;;  %2089 = vmatpush3.bf16.msra.mxu0 %v2088_v7 }
 0x433   : > { %2090 = vmatprep.subr.bf16.mxu0 %v2359_v10 }
 0x434   : > { %749 = vadd.xlane.f32.xlu0 %v748_v8  ;;  %v1555_v8 = vld [vmem:[%s2893_s11 + $0x20] sm:$0xff] }
 0x435   : > { %2077 = vmatpush3.bf16.msra.mxu1 %v2076_v28  ;;  %v1896_v28 = vld [vmem:[%s2892_s10] ss:$0 sm:$0xff] }
 0x436   : > { %2078 = vmatprep.subr.bf16.mxu1 %v2359_v10 }
 0x4b0   : > { %v916_v9 = vpop.xlane.xlu0 %915 }
 0x4b9   : > { %v1087_v15 = vpop.xlane.xlu1 %1086 }
 0x4bd   : > { %v1258_v11 = vpop.xlane.xlu0 %1257 }
 0x4c1   : > { %v750_v12 = vpop.xlane.xlu0 %749 }
 0x4c2   : > { %2189 = vrcp.f32 %v750_v12  ;;  %v1557_v12 = vld [vmem:[%s2893_s11 + $0x30] sm:$0xff] }
 0x4c3   : > { %2191 = vrcp.f32 %v916_v9  ;;  %v1556_v9 = vld [vmem:[%s2893_s11 + $0x28] sm:$0xff] }
 0x4c4   : > { %2193 = vrcp.f32 %v1087_v15 }
 0x4c5   : > { %2195 = vrcp.f32 %v1258_v11  ;;  %v2091_v11 = vpack.c.bf16 %v1556_v9, %v1555_v8 }
 0x4c7   : > { %2092 = vmatpush3.bf16.msra.mxu0 %v2091_v11 }
 0x4c8   : > { %2093 = vmatprep.subr.bf16.mxu0 %v2359_v10 }
 0x4cc   : > { %v2190_v14 = vpop.eup %2189 }
 0x4cd   : > { %v2192_v21 = vpop.eup %2191 }
 0x4ce   : > { %v2194_v29 = vpop.eup %2193 }
 0x4cf   : > { %v2196_v33 = vpop.eup %2195 }
 0x4f1   : > { %v824_v16 = vpop.f32.mrb[4].mxu1 }
 0x4f2   : > { %v828_v17 = vmul.f32 %v2190_v14, %v824_v16  ;;  %v1978_v18 = vpop.f32.mrb[5].mxu1  ;;  %v1558_v14 = vld [vmem:[%s2893_s11 + $0x38] sm:$0xff]  ;;  %v1559_v16 = vld [vmem:[%s2893_s11 + $0x40] sm:$0xff] }
 0x4f3   : > { %v2094_v15 = vpack.c.bf16 %v1558_v14, %v1557_v12 }
 0x4f4   : > { %829 = vst.msk [vmem:[#allocation2] sm:$0xff] %vm666_vm2, %v828_v17  ;;  %v1560_v17 = vld [vmem:[%s2893_s11 + $0x48] sm:$0xff] }
 0x4f5   : > { %2095 = vmatpush3.bf16.msra.mxu0 %v2094_v15  ;;  %v2097_v18 = vpack.c.bf16 %v1560_v17, %v1559_v16 }
 0x4f6   : > { %2096 = vmatprep.subr.bf16.mxu0 %v2359_v10 }
 0x4f8   : > { %v990_v22 = vpop.f32.mrb[6].mxu1 }
 0x4f9   : > { %v994_v26 = vmul.f32 %v2192_v21, %v990_v22  ;;  %v1988_v27 = vpop.f32.mrb[7].mxu1  ;;  %2098 = vmatpush3.bf16.msra.mxu0 %v2097_v18  ;;  %v2100_v21 = vpack.c.bf16 %v1562_v20, %v1561_v19  ;;  %v1563_v22 = vld [vmem:[%s2893_s11 + $0x60] sm:$0xff] }
 0x4fa   : > { %2099 = vmatprep.subr.bf16.mxu0 %v2359_v10  ;;  %v2103_v24 = vpack.c.bf16 %v1564_v23, %v1563_v22 }
 0x4fb   : > { %996 = vrot.lane.b32.xlu1 %v994_v26, %s2373_s18  ;;  %v1566_v26 = vld [vmem:[%s2893_s11 + $0x78] sm:$0xff]  ;;  %s2741_s18 = scalar_lea.hbm %s2896_s14, %s2735_s30 }
 0x4fc   : > { %v2106_v27 = vpack.c.bf16 %v1566_v26, %v1565_v25 }
 0x4fd   : > { %2101 = vmatpush3.bf16.msra.mxu0 %v2100_v21 }
 0x4fe   : > { %v1161_v30 = vpop.f32.mrb[8].mxu1  ;;  %2102 = vmatprep.subr.bf16.mxu0 %v2359_v10 }
 0x4ff   : > { %v1165_v31 = vmul.f32 %v2194_v29, %v1161_v30  ;;  %v1998_v32 = vpop.f32.mrb[9].mxu1 }
 0x501   : > { %1167 = vrot.lane.b32.xlu0 %v1165_v31, %s2374_s19  ;;  %2104 = vmatpush3.bf16.msra.mxu0 %v2103_v24  ;;  %s2922_s19 = scalar_lea.vmem [#allocation5], %s2553_s20 }
 0x502   : > { %v1332_v34 = vpop.f32.mrb[10].mxu1  ;;  %2105 = vmatprep.subr.bf16.mxu0 %v2359_v10 }
 0x503   : > { %v1336_v35 = vmul.f32 %v2196_v33, %v1332_v34  ;;  %v2008_v36 = vpop.f32.mrb[11].mxu1 }
 0x505   : > { %1338 = vrot.lane.b32.xlu1 %v1336_v35, %s2375_s26  ;;  %2107 = vmatpush3.bf16.msra.mxu0 %v2106_v27  ;;  %s2745_s26 = scalar_lea.sflag [#allocation6], %s1652_s29 }
 0x56d   : > { %v997_v37 = vpop.permute.xlu1 %996 }
 0x56e   : > { %1000 = vst.msk [vmem:[#allocation2] sm:$0xff] %vm999_vm3, %v997_v37 }
 0x573   : > { %v1168_v38 = vpop.permute.xlu0 %1167 }
 0x574   : > { %1171 = vst.msk [vmem:[#allocation2] sm:$0xff] %vm1170_vm4, %v1168_v38 }
 0x577   : > { %v1339_v39 = vpop.permute.xlu1 %1338 }
 0x578   : > { %1342 = vst.msk [vmem:[#allocation2] sm:$0xff] %vm1341_vm5, %v1339_v39 }
 0x57f   : > { %v1343_v40 = vld [vmem:[#allocation2] sm:$0xff] }
 0x580   : > { %2018 = vmatmul.mubr.msk.f32.vlgmr.msra.gmra.mrb[12].mxu1 %vm548_vm0, %v1343_v40 }
 0x581   : > { %2028 = vmatprep.mubr.msk.f32.mxu1 %vm2360_vm1, %v2361_v13 }
 0x653   : > { %v1424_v42 = vpop.f32.mrb[12].mxu1 }
 0x654   : > { %v1425_v43 = vadd.f32 %v1892_v41, %v1424_v42  ;;  %v2019_v44 = vpop.f32.mrb[13].mxu1 }
 0x656   : > { %1428 = vst.msk [vmem:[%s2902_s1] sm:$0xff] %vm548_vm0, %v1425_v43  ;;  %v2649_v45 = vadd.f32 %v1425_v43, %v2520_v0  ;;  %v1460_v0 = vld [vmem:[%s2891_s9 + $0x8] sm:$0xff]  ;;  %s1689_s1 = sshll.u32 %s2922_s19, 4  ;;  %s1690_s1 = int_to_ptr.vmem [resolvable:$true] %s1689_s1 }
 0x657   : > { %v2079_v52 = vpack.c.bf16 %v1460_v0, %v1459_v51  ;;  %s2203_s3 = scalar_lea.vmem %s1690_s1, 128  ;;  %p2210_p0 = scmp.lt.s32.totalorder %s1690_s1, %s2208_s5 }
 0x658   : > { %v1432_v46 = vsel %vm548_vm0, %v2649_v45, 0.0  ;;  %p2204_p11 = scmp.ne.s32.totalorder %s1690_s1, %s2203_s3  ;;  %p2211_p1 = scmp.lt.s32.totalorder %s2209_s25, %s2203_s3 }
 0x659   : > { %1433 = vadd.xlane.f32.xlu1 %v1432_v46  ;;  %2080 = vmatpush3.bf16.msra.mxu1 %v2079_v52 }
 0x65a   : > { %2081 = vmatprep.subr.bf16.mxu1 %v2359_v10  ;;  %p2205_p12 = pnand %p2204_p11, %p2505_p5  ;;  %p2212_p2 = por %p2211_p1, %p2210_p0 }
 0x65c   : > { %p2206_p13 = pneg %p2205_p12 }
 0x65d   : > { %2083 = vmatpush3.bf16.msra.mxu1 %v2082_v55 }
 0x65e   : > { %p2213_p3 = pnand %p2212_p2, %p2206_p13 }
 0x6e6   : > { %v1434_v47 = vpop.xlane.xlu1 %1433 }
 0x6e7   : > { %v1435_v13 = vmul.f32 0.03125, %v1434_v47 }
 0x6e9   : > { %v1436_v48 = vsub.f32 %v2649_v45, %v1435_v13 }
 0x6eb   : > { %v1437_v49 = vmul.f32 %v1436_v48, %v1436_v48 }
 0x6ed   : > { %v1438_v50 = vsel %vm548_vm0, %v1437_v49, 0.0 }
 0x6ee   : > { %1439 = vadd.xlane.f32.xlu0 %v1438_v50 }
 0x77b   : > { %v1440_v56 = vpop.xlane.xlu0 %1439 }
 0x77c   : > { %v1441_v57 = vmul.f32 0.03125, %v1440_v56 }
 0x77e   : > { %v1442_v58 = vadd.f32 1e-05, %v1441_v57 }
 0x780   : > { %2197 = vrsqrt.f32 %v1442_v58 }
 0x78a   : > { %v2198_v59 = vpop.eup %2197 }
 0x78b   : > { %v1444_v61 = vmul.f32 %v2198_v59, %v1436_v48 }
 0x78d   : > { %v1451_v63 = vmul.f32 %v1894_v60, %v1444_v61 }
 0x78f   : > { %v1458_v1 = vadd.f32 %v1895_v62, %v1451_v63 }
 0x791   : > { %2029 = vmatmul.mubr.msk.f32.vlgmr.msra.gmra.mrb[14].mxu1 %vm548_vm0, %v1458_v1 }
 0x864   : > { %v1539_v29 = vpop.f32.mrb[14].mxu1 }
 0x865   : > { %v1540_v30 = vadd.f32 %v1896_v28, %v1539_v29  ;;  %v2030_v10 = vpop.f32.mrb[15].mxu1 }
 0x867   : > { %v1898_v31 = vmul.f32 -1.702, %v1540_v30 }
 0x869   : > { %v1545_v32 = vmul.f32 1.442695, %v1898_v31 }
 0x86b   : > { %2199 = vpow2.f32 %v1545_v32 }
 0x875   : > { %v2200_v33 = vpop.eup %2199 }
 0x876   : > { %v1547_v34 = vadd.f32 1.0, %v2200_v33 }
 0x878   : > { %2201 = vrcp.f32 %v1547_v34 }
 0x882   : > { %v2202_v35 = vpop.eup %2201 }
 0x883   : > { %v1550_v36 = vmul.f32 %v2202_v35, %v1540_v30 }
 0x885   : > { %2064 = vmatmul.mubr.f32.vlgmr.msra.gmra.mrb[6].mxu0 %v1550_v36 }
 0x886   : > { %2216 = shalt.err (!%p2213_p3)
}
 0x887   : > { %s2217_s29 = scalar_lea.hbm %s2741_s18, 128  ;;  %s2221_s4 = scalar_lea.hbm %s2896_s14, 256 }
 0x888   : > { %p2218_p4 = scmp.ne.s32.totalorder %s2741_s18, %s2217_s29  ;;  %p2222_p9 = scmp.lt.u32.totalorder %s2741_s18, %s2896_s14 }
 0x889   : > { %p2223_p10 = scmp.lt.u32.totalorder %s2221_s4, %s2217_s29  ;;  %p2225_p12 = scmp.lt.u32.totalorder %s2217_s29, %s2741_s18 }
 0x88a   : > { %p2219_p7 = pnand %p2218_p4, %p2505_p5 }
 0x88b   : > { %p2224_p11 = por %p2223_p10, %p2222_p9 }
 0x88c   : > { %p2220_p8 = pneg %p2219_p7 }
 0x88d   : > { %p2226_p13 = por %p2225_p12, %p2224_p11 }
 0x88f   : > { %p2227_p0 = pnand %p2226_p13, %p2220_p8 }
 0x891   : > { %2230 = shalt.err (!%p2227_p0)
}
 0x892   : > { %2109 = dma.vmem_to_hbm [thread:$0]  (%p2505_p5), %s1690_s1, 128, %s2741_s18, %s2745_s26  }
 0x893   : > { %s2769_s2 = scalar_lea.hbm %s2897_s15, %s2735_s30  ;;  %s2923_s28 = scalar_lea.vmem [#allocation7], %s2553_s20 }
 0x894   : > { %s1702_s4 = sshll.u32 %s2923_s28, 4  ;;  %s2377_s19 = smov [#allocation7]   ;;  %s1703_s4 = int_to_ptr.vmem [resolvable:$true] %s1702_s4 }
 0x895   : > { %s2231_s29 = scalar_lea.vmem %s1703_s4, 128  ;;  %s2235_s5 = sshll.u32 %s2377_s19, 4  ;;  %s2236_s5 = int_to_ptr.vmem [resolvable:$false] %s2235_s5 }
 0x896   : > { %p2232_p1 = scmp.ne.s32.totalorder %s1703_s4, %s2231_s29  ;;  %s2237_s6 = scalar_lea.vmem %s2236_s5, 256 }
 0x897   : > { %p2238_p4 = scmp.lt.s32.totalorder %s1703_s4, %s2236_s5  ;;  %p2239_p7 = scmp.lt.s32.totalorder %s2237_s6, %s2231_s29 }
 0x898   : > { %p2233_p2 = pnand %p2232_p1, %p2505_p5 }
 0x899   : > { %p2240_p8 = por %p2239_p7, %p2238_p4 }
 0x89a   : > { %p2234_p3 = pneg %p2233_p2 }
 0x89c   : > { %p2241_p9 = pnand %p2240_p8, %p2234_p3 }
 0x89e   : > { %2244 = shalt.err (!%p2241_p9)
}
 0x89f   : > { %s2245_s18 = scalar_lea.hbm %s2769_s2, 128  ;;  %s2249_s25 = scalar_lea.hbm %s2897_s15, 256 }
 0x8a0   : > { %p2246_p10 = scmp.ne.s32.totalorder %s2769_s2, %s2245_s18  ;;  %p2250_p13 = scmp.lt.u32.totalorder %s2769_s2, %s2897_s15 }
 0x8a1   : > { %p2251_p0 = scmp.lt.u32.totalorder %s2249_s25, %s2245_s18  ;;  %p2253_p2 = scmp.lt.u32.totalorder %s2245_s18, %s2769_s2 }
 0x8a2   : > { %p2247_p11 = pnand %p2246_p10, %p2505_p5 }
 0x8a3   : > { %p2252_p1 = por %p2251_p0, %p2250_p13 }
 0x8a4   : > { %p2248_p12 = pneg %p2247_p11 }
 0x8a5   : > { %p2254_p3 = por %p2253_p2, %p2252_p1 }
 0x8a7   : > { %p2255_p4 = pnand %p2254_p3, %p2248_p12 }
 0x8a9   : > { %2258 = shalt.err (!%p2255_p4)
}
 0x8aa   : > { %2110 = dma.vmem_to_hbm [thread:$0]  (%p2505_p5), %s1703_s4, 128, %s2769_s2, %s2745_s26   ;;  %v1899_v37 = vld [vmem:[%s2894_s12] ss:$0 sm:$0xff] }
 0x8ab   : > { %s540_s5 = scalar_lea.vmem [#allocation8], %s2553_s20  ;;  %s2903_s1 = scalar_lea.vmem [#allocation3], %s2553_s20 }
 0x8ac   : > { %s1715_s18 = sshll.u32 %s540_s5, 4  ;;  %s1676_s3 = sshll.u32 %s2903_s1, 4  ;;  %s2804_s18 = int_to_ptr.vmem [resolvable:$true] %s1715_s18  ;;  %s2813_s3 = int_to_ptr.vmem [resolvable:$true] %s1676_s3 }
 0x8ad   : > { %s2802_s19 = scalar_lea.hbm %s2898_s16, %s2735_s30  ;;  %s2811_s4 = scalar_lea.hbm %s2895_s13, %s2735_s30 }
 0x8ae   : > { %s1663_s6 = scalar_lea.sflag [#allocation9], %s2547_s23  ;;  %s2259_s29 = scalar_lea.vmem %s2804_s18, 128 }
 0x8af   : > { %p2260_p7 = scmp.ne.s32.totalorder %s2804_s18, %s2259_s29  ;;  %s2378_s25 = smov [#allocation8]  }
 0x8b0   : > { %s2263_s28 = sshll.u32 %s2378_s25, 4  ;;  %s2264_s28 = int_to_ptr.vmem [resolvable:$false] %s2263_s28 }
 0x8b1   : > { %p2261_p8 = pnand %p2260_p7, %p2505_p5  ;;  %s2265_s1 = scalar_lea.vmem %s2264_s28, 256 }
 0x8b2   : > { %p2266_p10 = scmp.lt.s32.totalorder %s2804_s18, %s2264_s28  ;;  %p2267_p11 = scmp.lt.s32.totalorder %s2265_s1, %s2259_s29 }
 0x8b3   : > { %p2262_p9 = pneg %p2261_p8 }
 0x8b4   : > { %p2268_p12 = por %p2267_p11, %p2266_p10 }
 0x8b6   : > { %p2269_p13 = pnand %p2268_p12, %p2262_p9 }
 0x958   : > { %v1640_v38 = vpop.f32.mrb[6].mxu0 }
 0x959   : > { %v1641_v39 = vadd.f32 %v1899_v37, %v1640_v38  ;;  %v2065_v40 = vpop.f32.mrb[7].mxu0 }
 0x95b   : > { %v1645_v41 = vadd.f32 %v1641_v39, %v2649_v45  ;;  %1644 = vst.msk [vmem:[%s540_s5] sm:$0xff] %vm548_vm0, %v1641_v39 }
 0x95c   : > { %2272 = shalt.err (!%p2269_p13)
}
 0x95d   : > { %s2273_s30 = scalar_lea.hbm %s2802_s19, 128  ;;  %s2277_s2 = scalar_lea.hbm %s2898_s16, 256 }
 0x95e   : > { %p2274_p0 = scmp.ne.s32.totalorder %s2802_s19, %s2273_s30  ;;  %p2278_p3 = scmp.lt.u32.totalorder %s2802_s19, %s2898_s16 }
 0x95f   : > { %p2279_p4 = scmp.lt.u32.totalorder %s2277_s2, %s2273_s30  ;;  %p2281_p8 = scmp.lt.u32.totalorder %s2273_s30, %s2802_s19 }
 0x960   : > { %p2275_p1 = pnand %p2274_p0, %p2505_p5 }
 0x961   : > { %p2280_p7 = por %p2279_p4, %p2278_p3 }
 0x962   : > { %p2276_p2 = pneg %p2275_p1 }
 0x963   : > { %p2282_p9 = por %p2281_p8, %p2280_p7 }
 0x965   : > { %p2283_p10 = pnand %p2282_p9, %p2276_p2 }
 0x967   : > { %2286 = shalt.err (!%p2283_p10)
}
 0x968   : > { %2111 = dma.vmem_to_hbm [thread:$0]  (%p2505_p5), %s2804_s18, 128, %s2802_s19, %s1663_s6  }
 0x969   : > { %s2924_s1 = scalar_lea.vmem [#allocation3], %s2553_s20  ;;  %s1648_s29 = scalar_lea.sflag [#allocation4], %s2547_s23 }
 0x96a   : > { %1646 = vst.msk [vmem:[%s2924_s1] sm:$0xff] %vm548_vm0, %v1645_v41  ;;  %s2287_s5 = scalar_lea.vmem %s2813_s3, 128  ;;  %s2379_s30 = smov [#allocation3]  }
 0x96b   : > { %p2288_p11 = scmp.ne.s32.totalorder %s2813_s3, %s2287_s5  ;;  %s2291_s26 = sshll.u32 %s2379_s30, 4  ;;  %s2292_s26 = int_to_ptr.vmem [resolvable:$false] %s2291_s26 }
 0x96c   : > { %s2293_s2 = scalar_lea.vmem %s2292_s26, 256  ;;  %p2294_p0 = scmp.lt.s32.totalorder %s2813_s3, %s2292_s26 }
 0x96d   : > { %p2289_p12 = pnand %p2288_p11, %p2505_p5  ;;  %p2295_p1 = scmp.lt.s32.totalorder %s2293_s2, %s2287_s5 }
 0x96f   : > { %p2290_p13 = pneg %p2289_p12  ;;  %p2296_p2 = por %p2295_p1, %p2294_p0 }
 0x971   : > { %p2297_p3 = pnand %p2296_p2, %p2290_p13 }
 0x973   : > { %2300 = shalt.err (!%p2297_p3)
}
 0x974   : > { %s2301_s23 = scalar_lea.hbm %s2811_s4, 128  ;;  %s2305_s19 = scalar_lea.hbm %s2895_s13, 256 }
 0x975   : > { %p2302_p4 = scmp.ne.s32.totalorder %s2811_s4, %s2301_s23  ;;  %p2306_p9 = scmp.lt.u32.totalorder %s2811_s4, %s2895_s13 }
 0x976   : > { %p2307_p10 = scmp.lt.u32.totalorder %s2305_s19, %s2301_s23  ;;  %p2309_p12 = scmp.lt.u32.totalorder %s2301_s23, %s2811_s4 }
 0x977   : > { %p2303_p7 = pnand %p2302_p4, %p2505_p5 }
 0x978   : > { %p2308_p11 = por %p2307_p10, %p2306_p9 }
 0x979   : > { %p2304_p8 = pneg %p2303_p7 }
 0x97a   : > { %p2310_p13 = por %p2309_p12, %p2308_p11 }
 0x97c   : > { %p2311_p0 = pnand %p2310_p13, %p2304_p8 }
 0x97e   : > { %2314 = shalt.err (!%p2311_p0)
}
 0x97f   : > { %2108 = dma.vmem_to_hbm [thread:$0]  (%p2505_p5), %s2813_s3, 128, %s2811_s4, %s1648_s29  }
 0x980 PF: > { %p2129_p1 = scmp.ge.s32.totalorder %s2357_s24, 2  ;;  %s1727_s28 = sand.u32 1, %s2345_s21  }
 0x981   : > { %s1728_s1 = scalar_lea.sflag [#allocation4], %s1727_s28 }
 0x982   : > { %p2117_p2 = pnand %p2129_p1, %p2509_p6 }
 0x984   : > { %2332 = dma.done.wait (!%p2117_p2), %s1728_s1, 128  }
 0x985   : > { %2334 = vsyncadd (!%p2117_p2), %s1728_s1, 4294967168  ;;  %s2925_s5 = sadd.s32 4294967294, %s2357_s24  }
 0x986   : > { %s1736_s30 = sand.u32 1, %s2925_s5  }
 0x987   : > { %s1737_s26 = scalar_lea.sflag [#allocation6], %s1736_s30 }
 0x988   : > { %2336 = dma.done.wait (!%p2117_p2), %s1737_s26, 256  }
 0x989   : > { %2338 = vsyncadd (!%p2117_p2), %s1737_s26, 4294967040  ;;  %s1755_s0 = scalar_lea.sflag [#allocation9], %s1727_s28 }
 0x98a   : > { %2340 = dma.done.wait (!%p2117_p2), %s1755_s0, 128  }
 0x98b   : > { %2342 = vsyncadd (!%p2117_p2), %s1755_s0, 4294967168  ;;  %s2926_s3 = sld [smem:[#allocation13_spill]]  ;;  %s2927_s23 = sld [smem:[#allocation14_spill]] }
 0x98c   : > { %p33_p5 = scmp.ge.s32.totalorder %s2490_s27, 4   ;;  %s2928_s21 = smov %s2349_s22 }
 0x98d   : > { %s2930_s24 = smov %s2490_s27 }
 0x98e   :  { %35 = sbr.rel (!%p33_p5) target bundleno = 15 (0xf), region = 156 }
 0x991   : > { %s2929_s22 = smov %s2926_s3 }
 0x995   :  { %1760 = vsyncpa [#allocation4], 1 }
 0x996   :  { %1762 = vsyncpa [#allocation4 + $0x1], 1 }
 0x997   :  { %1763 = vsyncpa [#allocation6], 1 }
 0x998   :  { %1765 = vsyncpa [#allocation6 + $0x1], 1 }
 0x999   :  { %1766 = vsyncpa [#allocation9], 1 }
 0x99a   :  { %1768 = vsyncpa [#allocation9 + $0x1], 1 }

</bundles_post_ra>
